<compile_context>
chip_gen: v7x
topology: tpu7x:2x2x1
jax: 0.10.0
libtpu: 0.0.40
codegen_flags: <defaults>
</compile_context>

<pallas_src>
import jax
import jax.numpy as jnp
from jax.experimental import pallas as pl
from jax.experimental.pallas import tpu as pltpu

HIDDEN = 128
SUBLANE = 8          # pad the final layer's output columns only to this


def _round_up(n, m):
    return ((n + m - 1) // m) * m


def _mlp_kernel(x_ref, w1_ref, b1_ref, w2_ref, b2_ref, w3_ref, b3_ref,
                w4_ref, b4_ref, y_ref):
    """Fused 4-layer MLP on one (tm, in_feat) row tile.

    f32 x is cast to bf16 in-kernel; all matmuls are bf16 on the MXU with f32
    accumulation; bias-add + ReLU stay f32 and are fused with the bf16
    downcast so only the bf16 intermediate is materialized between layers.
    Output is a narrow (tm, out_pad) f32 slab (out_pad is a sublane multiple
    equal to the full output width, so stores/DMA stay contiguous).
    """
    h = jnp.dot(x_ref[...].astype(jnp.bfloat16), w1_ref[...],
                preferred_element_type=jnp.float32)
    h = jnp.maximum(h + b1_ref[...], 0.0).astype(jnp.bfloat16)
    h = jnp.dot(h, w2_ref[...], preferred_element_type=jnp.float32)
    h = jnp.maximum(h + b2_ref[...], 0.0).astype(jnp.bfloat16)
    h = jnp.dot(h, w3_ref[...], preferred_element_type=jnp.float32)
    h = jnp.maximum(h + b3_ref[...], 0.0).astype(jnp.bfloat16)
    y = jnp.dot(h, w4_ref[...], preferred_element_type=jnp.float32)
    y_ref[...] = (y + b4_ref[...]).astype(y_ref.dtype)


def prepare_params(params):
    """One-time weight prep: bf16 MXU operands, final layer padded to a
    sublane multiple of output columns (zero columns -> exact, discarded).
    Biases stay f32 (added to the f32 accumulator)."""
    w1, b1, w2, b2, w3, b3, w4, b4 = params
    out_feat = w4.shape[1]
    out_pad = _round_up(out_feat, SUBLANE)
    w4p = jnp.pad(w4, ((0, 0), (0, out_pad - out_feat)))
    b4p = jnp.pad(b4, ((0, 0), (0, out_pad - out_feat)))
    bf16 = jnp.bfloat16
    return (w1.astype(bf16), b1, w2.astype(bf16), b2,
            w3.astype(bf16), b3, w4p.astype(bf16), b4p), out_feat


def occ_mlp(x2d, prep, out_feat, *, tm=4096):
    """x2d: [R, in_feat] f32.  prep: output of prepare_params.
    Returns net(x2d): [R, out_feat] f32."""
    R, in_feat = x2d.shape
    w1b, b1, w2b, b2, w3b, b3, w4b, b4p = prep
    out_pad = w4b.shape[1]

    # Row tile: big enough to amortize the ~0.35us/step grid overhead, capped
    # so the grid stays >= 2 (both v7x TensorCores get a tile) and so small R
    # doesn't compute a mostly-empty tile.  Ragged last block is handled by
    # Pallas (OOB output rows are never written back).
    tm = max(128, min(tm, _round_up(pl.cdiv(R, 2), 128)))
    grid = (pl.cdiv(R, tm),)
    rows = grid[0] * tm

    def full(arr):
        return pl.BlockSpec(arr.shape, lambda i: (0,) * arr.ndim)

    flops = 2 * rows * (in_feat * HIDDEN + 2 * HIDDEN * HIDDEN + HIDDEN * out_pad)
    bytes_accessed = (
        R * in_feat * 4 + R * out_pad * 4                                    # f32 x in, f32 y out
        + (in_feat * HIDDEN + 2 * HIDDEN * HIDDEN + HIDDEN * out_pad) * 2    # bf16 weights
        + (3 * HIDDEN + out_pad) * 4)                                        # f32 biases

    y = pl.pallas_call(
        _mlp_kernel,
        out_shape=jax.ShapeDtypeStruct((R, out_pad), jnp.float32),
        grid_spec=pltpu.PrefetchScalarGridSpec(
            num_scalar_prefetch=0,
            grid=grid,
            in_specs=[
                pl.BlockSpec((tm, in_feat), lambda i: (i, 0)),   # streamed f32 x tile
                full(w1b), full(b1),
                full(w2b), full(b2),
                full(w3b), full(b3),
                full(w4b), full(b4p),
            ],
            out_specs=pl.BlockSpec((tm, out_pad), lambda i: (i, 0)),
        ),
        compiler_params=pltpu.CompilerParams(
            dimension_semantics=("parallel",),   # row axis shards across v7x's 2 TCs
            has_side_effects=True,               # keep the "wasted" compute under jit
        ),
        cost_estimate=pl.CostEstimate(
            flops=flops, transcendentals=0, bytes_accessed=bytes_accessed),
    )(x2d, w1b, b1, w2b, b2, w3b, b3, w4b, b4p)

    return y[:, :out_feat]


def init_params(key, in_feat, out_feat):
    """Deterministic synthetic params; weights stored [in, out], biases [1, out]."""
    dims = [(in_feat, HIDDEN), (HIDDEN, HIDDEN), (HIDDEN, HIDDEN), (HIDDEN, out_feat)]
    params = []
    for din, dout in dims:
        kw, kb, key = jax.random.split(key, 3)
        scale = 1.0 / jnp.sqrt(jnp.float32(din))
        w = jax.random.uniform(kw, (din, dout), jnp.float32, -scale, scale)
        b = jax.random.uniform(kb, (1, dout), jnp.float32, -scale, scale)
        params += [w, b]
    return tuple(params)


def occ_linear_decoder_forward(x, prep, out_feat):
    """Matches OccLinearDecoder.forward: computes y = net(x), then returns x.

    The kernel is marked has_side_effects=True so the discarded MLP compute
    still executes under jit (mirroring PyTorch's wasted work)."""
    in_feat = x.shape[-1]
    y = occ_mlp(x.reshape(-1, in_feat), prep, out_feat)
    del y                                      # reference module discards it
    return x


if __name__ == "__main__":
    key = jax.random.PRNGKey(0)
    in_feat, out_feat = 32, 1
    B, N = 2, 300       # R = 600: not a tile multiple (exercises ragged last
                        # block), and the tm cap keeps grid = 2 for v7x.
    kx, kp = jax.random.split(key)
    x = jax.random.normal(kx, (B, N, in_feat), jnp.float32)
    params = init_params(kp, in_feat, out_feat)
    prep, out_feat = prepare_params(params)

    x2d = x.reshape(-1, in_feat)
    y = jax.block_until_ready(occ_mlp(x2d, prep, out_feat))
    assert y.shape == (B * N, out_feat)

    # Reference: same bf16-operand / f32-accumulation recipe in plain JAX.
    def ref_mlp(z):
        w1, b1, w2, b2, w3, b3, w4, b4 = params
        bf, f32 = jnp.bfloat16, jnp.float32
        h = jnp.maximum(jnp.dot(z.astype(bf), w1.astype(bf),
                                preferred_element_type=f32) + b1, 0.0)
        h = jnp.maximum(jnp.dot(h.astype(bf), w2.astype(bf),
                                preferred_element_type=f32) + b2, 0.0)
        h = jnp.maximum(jnp.dot(h.astype(bf), w3.astype(bf),
                                preferred_element_type=f32) + b3, 0.0)
        return jnp.dot(h.astype(bf), w4.astype(bf),
                       preferred_element_type=f32) + b4

    y_ref = ref_mlp(x2d)
    assert jnp.allclose(y, y_ref, atol=1e-2, rtol=1e-2), \
        float(jnp.max(jnp.abs(y - y_ref)))

    # Module-level forward returns x exactly, like the PyTorch module.
    out = jax.block_until_ready(occ_linear_decoder_forward(x, prep, out_feat))
    assert out.shape == x.shape
    assert jnp.array_equal(out, x)

    print("KERNEL_OK")
</pallas_src>

<mosaic_0001>
module attributes {stable_mosaic.version = 11 : i64} {
  func.func @_mlp_kernel(%arg0: i32, %arg1: memref<384x32xf32, #tpu.memory_space<vmem>>, %arg2: memref<32x128xbf16, #tpu.memory_space<vmem>>, %arg3: memref<1x128xf32, #tpu.memory_space<vmem>>, %arg4: memref<128x128xbf16, #tpu.memory_space<vmem>>, %arg5: memref<1x128xf32, #tpu.memory_space<vmem>>, %arg6: memref<128x128xbf16, #tpu.memory_space<vmem>>, %arg7: memref<1x128xf32, #tpu.memory_space<vmem>>, %arg8: memref<128x8xbf16, #tpu.memory_space<vmem>>, %arg9: memref<1x8xf32, #tpu.memory_space<vmem>>, %arg10: memref<384x8xf32, #tpu.memory_space<vmem>>) attributes {dimension_semantics = [#tpu.dimension_semantics<parallel>], iteration_bounds = array<i64: 2>, scalar_prefetch = 0 : i64, scratch_operands = 0 : i64, tpu.core_type = #tpu.core_type<tc>, window_params = [{transform_indices = @transform_0, window_bounds = array<i64: 384, 32>}, {pipeline_mode = #tpu.pipeline_mode<synchronous>, transform_indices = @transform_1, window_bounds = array<i64: 32, 128>}, {pipeline_mode = #tpu.pipeline_mode<synchronous>, transform_indices = @transform_2, window_bounds = array<i64: 1, 128>}, {pipeline_mode = #tpu.pipeline_mode<synchronous>, transform_indices = @transform_3, window_bounds = array<i64: 128, 128>}, {pipeline_mode = #tpu.pipeline_mode<synchronous>, transform_indices = @transform_4, window_bounds = array<i64: 1, 128>}, {pipeline_mode = #tpu.pipeline_mode<synchronous>, transform_indices = @transform_5, window_bounds = array<i64: 128, 128>}, {pipeline_mode = #tpu.pipeline_mode<synchronous>, transform_indices = @transform_6, window_bounds = array<i64: 1, 128>}, {pipeline_mode = #tpu.pipeline_mode<synchronous>, transform_indices = @transform_7, window_bounds = array<i64: 128, 8>}, {pipeline_mode = #tpu.pipeline_mode<synchronous>, transform_indices = @transform_8, window_bounds = array<i64: 1, 8>}, {transform_indices = @transform_9, window_bounds = array<i64: 384, 8>}]} {
    %c0 = arith.constant 0 : index
    %c0_0 = arith.constant 0 : index
    %0 = vector.load %arg1[%c0, %c0_0] : memref<384x32xf32, #tpu.memory_space<vmem>>, vector<384x32xf32>
    %1 = arith.truncf %0 : vector<384x32xf32> to vector<384x32xbf16>
    %c0_1 = arith.constant 0 : index
    %c0_2 = arith.constant 0 : index
    %2 = vector.load %arg2[%c0_1, %c0_2] : memref<32x128xbf16, #tpu.memory_space<vmem>>, vector<32x128xbf16>
    %cst = arith.constant dense<0.000000e+00> : vector<384x128xf32>
    %3 = tpu.matmul %1, %2, %cst {dimension_numbers = #tpu.dot_dimension_numbers<[1], [0], [0], [1], [0, 0, 1, 1], [], []>} : vector<384x32xbf16>, vector<32x128xbf16>, vector<384x128xf32> -> vector<384x128xf32>
    %c0_3 = arith.constant 0 : index
    %c0_4 = arith.constant 0 : index
    %4 = vector.load %arg3[%c0_3, %c0_4] : memref<1x128xf32, #tpu.memory_space<vmem>>, vector<1x128xf32>
    %5 = vector.broadcast %4 : vector<1x128xf32> to vector<384x128xf32>
    %6 = arith.addf %3, %5 : vector<384x128xf32>
    %cst_5 = arith.constant 0.000000e+00 : f32
    %7 = vector.broadcast %cst_5 : f32 to vector<384x128xf32>
    %8 = arith.maximumf %6, %7 : vector<384x128xf32>
    %9 = arith.truncf %8 : vector<384x128xf32> to vector<384x128xbf16>
    %c0_6 = arith.constant 0 : index
    %c0_7 = arith.constant 0 : index
    %10 = vector.load %arg4[%c0_6, %c0_7] : memref<128x128xbf16, #tpu.memory_space<vmem>>, vector<128x128xbf16>
    %cst_8 = arith.constant dense<0.000000e+00> : vector<384x128xf32>
    %11 = tpu.matmul %9, %10, %cst_8 {dimension_numbers = #tpu.dot_dimension_numbers<[1], [0], [0], [1], [0, 0, 1, 1], [], []>} : vector<384x128xbf16>, vector<128x128xbf16>, vector<384x128xf32> -> vector<384x128xf32>
    %c0_9 = arith.constant 0 : index
    %c0_10 = arith.constant 0 : index
    %12 = vector.load %arg5[%c0_9, %c0_10] : memref<1x128xf32, #tpu.memory_space<vmem>>, vector<1x128xf32>
    %13 = vector.broadcast %12 : vector<1x128xf32> to vector<384x128xf32>
    %14 = arith.addf %11, %13 : vector<384x128xf32>
    %cst_11 = arith.constant 0.000000e+00 : f32
    %15 = vector.broadcast %cst_11 : f32 to vector<384x128xf32>
    %16 = arith.maximumf %14, %15 : vector<384x128xf32>
    %17 = arith.truncf %16 : vector<384x128xf32> to vector<384x128xbf16>
    %c0_12 = arith.constant 0 : index
    %c0_13 = arith.constant 0 : index
    %18 = vector.load %arg6[%c0_12, %c0_13] : memref<128x128xbf16, #tpu.memory_space<vmem>>, vector<128x128xbf16>
    %cst_14 = arith.constant dense<0.000000e+00> : vector<384x128xf32>
    %19 = tpu.matmul %17, %18, %cst_14 {dimension_numbers = #tpu.dot_dimension_numbers<[1], [0], [0], [1], [0, 0, 1, 1], [], []>} : vector<384x128xbf16>, vector<128x128xbf16>, vector<384x128xf32> -> vector<384x128xf32>
    %c0_15 = arith.constant 0 : index
    %c0_16 = arith.constant 0 : index
    %20 = vector.load %arg7[%c0_15, %c0_16] : memref<1x128xf32, #tpu.memory_space<vmem>>, vector<1x128xf32>
    %21 = vector.broadcast %20 : vector<1x128xf32> to vector<384x128xf32>
    %22 = arith.addf %19, %21 : vector<384x128xf32>
    %cst_17 = arith.constant 0.000000e+00 : f32
    %23 = vector.broadcast %cst_17 : f32 to vector<384x128xf32>
    %24 = arith.maximumf %22, %23 : vector<384x128xf32>
    %25 = arith.truncf %24 : vector<384x128xf32> to vector<384x128xbf16>
    %c0_18 = arith.constant 0 : index
    %c0_19 = arith.constant 0 : index
    %26 = vector.load %arg8[%c0_18, %c0_19] : memref<128x8xbf16, #tpu.memory_space<vmem>>, vector<128x8xbf16>
    %cst_20 = arith.constant dense<0.000000e+00> : vector<384x8xf32>
    %27 = tpu.matmul %25, %26, %cst_20 {dimension_numbers = #tpu.dot_dimension_numbers<[1], [0], [0], [1], [0, 0, 1, 1], [], []>} : vector<384x128xbf16>, vector<128x8xbf16>, vector<384x8xf32> -> vector<384x8xf32>
    %c0_21 = arith.constant 0 : index
    %c0_22 = arith.constant 0 : index
    %28 = vector.load %arg9[%c0_21, %c0_22] : memref<1x8xf32, #tpu.memory_space<vmem>>, vector<1x8xf32>
    %29 = vector.broadcast %28 : vector<1x8xf32> to vector<384x8xf32>
    %30 = arith.addf %27, %29 : vector<384x8xf32>
    %c0_23 = arith.constant 0 : index
    %c0_24 = arith.constant 0 : index
    %31 = vector.load %arg10[%c0_23, %c0_24] : memref<384x8xf32, #tpu.memory_space<vmem>>, vector<384x8xf32>
    tpu.vector_store %arg10[%c0_23, %c0_24], %30 {strides = array<i32>} : memref<384x8xf32, #tpu.memory_space<vmem>>, vector<384x8xf32>,
    return
  }
  func.func @transform_0(%arg0: i32) -> (i32, i32) {
    %c0_i32 = arith.constant 0 : i32
    %c0_i32_0 = arith.constant 0 : i32
    return %arg0, %c0_i32 : i32, i32
  }
  func.func @transform_1(%arg0: i32) -> (i32, i32) {
    %c0_i32 = arith.constant 0 : i32
    %c0_i32_0 = arith.constant 0 : i32
    %c0_i32_1 = arith.constant 0 : i32
    return %c0_i32, %c0_i32_0 : i32, i32
  }
  func.func @transform_2(%arg0: i32) -> (i32, i32) {
    %c0_i32 = arith.constant 0 : i32
    %c0_i32_0 = arith.constant 0 : i32
    %c0_i32_1 = arith.constant 0 : i32
    return %c0_i32, %c0_i32_0 : i32, i32
  }
  func.func @transform_3(%arg0: i32) -> (i32, i32) {
    %c0_i32 = arith.constant 0 : i32
    %c0_i32_0 = arith.constant 0 : i32
    %c0_i32_1 = arith.constant 0 : i32
    return %c0_i32, %c0_i32_0 : i32, i32
  }
  func.func @transform_4(%arg0: i32) -> (i32, i32) {
    %c0_i32 = arith.constant 0 : i32
    %c0_i32_0 = arith.constant 0 : i32
    %c0_i32_1 = arith.constant 0 : i32
    return %c0_i32, %c0_i32_0 : i32, i32
  }
  func.func @transform_5(%arg0: i32) -> (i32, i32) {
    %c0_i32 = arith.constant 0 : i32
    %c0_i32_0 = arith.constant 0 : i32
    %c0_i32_1 = arith.constant 0 : i32
    return %c0_i32, %c0_i32_0 : i32, i32
  }
  func.func @transform_6(%arg0: i32) -> (i32, i32) {
    %c0_i32 = arith.constant 0 : i32
    %c0_i32_0 = arith.constant 0 : i32
    %c0_i32_1 = arith.constant 0 : i32
    return %c0_i32, %c0_i32_0 : i32, i32
  }
  func.func @transform_7(%arg0: i32) -> (i32, i32) {
    %c0_i32 = arith.constant 0 : i32
    %c0_i32_0 = arith.constant 0 : i32
    %c0_i32_1 = arith.constant 0 : i32
    return %c0_i32, %c0_i32_0 : i32, i32
  }
  func.func @transform_8(%arg0: i32) -> (i32, i32) {
    %c0_i32 = arith.constant 0 : i32
    %c0_i32_0 = arith.constant 0 : i32
    %c0_i32_1 = arith.constant 0 : i32
    return %c0_i32, %c0_i32_0 : i32, i32
  }
  func.func @transform_9(%arg0: i32) -> (i32, i32) {
    %c0_i32 = arith.constant 0 : i32
    %c0_i32_0 = arith.constant 0 : i32
    return %arg0, %c0_i32 : i32, i32
  }
}

</mosaic_0001>

<bundles_post_ra>
// kernel: tpu_custom_call.1
= control target key start
LH: loop header
LB: loop body
LE: loop exit
PB: predicated region body
PF: predicated region fallthrough
CT: control target
= control target key end

     0   :  { %s3018_s30 = smov 0   ;;  %s3020_s10 = smov 0   ;;  %s3711_s0 = inlined_call_operand.vmem [shape: f32[600,32], index: 0, kind: input, shape index: {}]   ;;  %s3712_s1 = inlined_call_operand.vmem [shape: bf16[32,128], index: 1, kind: input, shape index: {}]   ;;  %s3713_s2 = inlined_call_operand.vmem [shape: f32[1,128], index: 2, kind: input, shape index: {}]   ;;  %s3714_s3 = inlined_call_operand.vmem [shape: bf16[128,128], index: 3, kind: input, shape index: {}]   ;;  %s3715_s4 = inlined_call_operand.vmem [shape: f32[1,128], index: 4, kind: input, shape index: {}]   ;;  %s3716_s5 = inlined_call_operand.vmem [shape: bf16[128,128], index: 5, kind: input, shape index: {}]   ;;  %s3717_s6 = inlined_call_operand.vmem [shape: f32[1,128], index: 6, kind: input, shape index: {}]   ;;  %s3718_s7 = inlined_call_operand.vmem [shape: bf16[128,8], index: 7, kind: input, shape index: {}]   ;;  %s3719_s8 = inlined_call_operand.vmem [shape: f32[1,8], index: 8, kind: input, shape index: {}]   ;;  %s3720_s9 = inlined_call_operand.vmem [shape: f32[600,8], index: 9, kind: output, shape index: {}]  }
   0x1   :  { %s3022_s11 = smov 0  }
   0x2 LB: > { %s3031_s12 = sadd.s32 4294967295, %s2934_s11   ;;  %s3033_s13 = sadd.s32 1, %s2934_s11   ;;  %s2934_s11 = sphi %s3022_s11, %s3729_s11   ;;  %s2930_s10 = sphi %s3020_s10, %s3728_s10   ;;  %s2926_s30 = sphi %s3018_s30, %s3727_s30  }
   0x3   : > { %s217_s14 = ssub.s32 %s2934_s11, %s3033_s13  ;;  %s220_s15 = sadd.s32 1, %s2930_s10 }
   0x4   : > { %p218_p0 = scmp.eq.s32.totalorder %s217_s14, 0  ;;  %p230_p1 = scmp.ne.s32.totalorder %s2930_s10, %s2926_s30 }
   0x5   : > { %p231_p2 = scmp.eq.s32.totalorder %s3031_s12, 1  ;;  %p2309_p3 = scmp.ge.s32.totalorder %s2934_s11, 1 }
   0x6   : > { %s3041_s16 = scalar_select %p218_p0, %s2930_s10, %s220_s15  }
   0x7   : > { %p3043_p4 = por %p231_p2, %p230_p1  ;;  %p296_p5 = scmp.lt.s32.totalorder %s2934_s11, 3 }
   0x9   : > { %p297_p6 = pnand %p2309_p3, %p296_p5 }
   0xa   : > { %v2850_v0 = vld [vmem:[%s3712_s1] sm:$0xff] (!%p297_p6)   ;;  %s3051_s20 = smul.u32 (!%p297_p6), 48, %s3031_s12  ;;  %v2851_v1 = vld [vmem:[%s3712_s1 + $0x8] sm:$0xff] (!%p297_p6)   ;;  %v2854_v4 = vld [vmem:[%s3714_s3 + $0x10] sm:$0xff] (!%p297_p6)   ;;  %vm450_vm0 = vcmask (!%p297_p6), 261120   ;;  %s332_s26 = sand.u32 (!%p297_p6), 1, %s2926_s30  }
   0xb   : > { %300 = sbr.rel (%p297_p6) target bundleno = 1074 (0x432), region = 56  ;;  %2500 = vmatprep.subr.bf16.mxu0 (!%p297_p6), %v2850_v0  ;;  %v2852_v2 = vld [vmem:[%s3714_s3] sm:$0xff] (!%p297_p6)   ;;  %v2853_v3 = vld [vmem:[%s3714_s3 + $0x8] sm:$0xff] (!%p297_p6)   ;;  %v2855_v14 = vld [vmem:[%s3714_s3 + $0x18] sm:$0xff] (!%p297_p6)   ;;  %vm1852_vm1 = vcmask (!%p297_p6), 64512  }
   0xc   : > { %p340_p7 = scmp.lt.s32.totalorder (!%p297_p6), %s3051_s20, 74  ;;  %2501 = vmatpush3.bf16.msra.mxu0 (!%p297_p6), %v2850_v0  ;;  %2552 = vmatprep.subr.bf16.mxu1 (!%p297_p6), %v2852_v2  ;;  %v2856_v19 = vld [vmem:[%s3714_s3 + $0x20] sm:$0xff] (!%p297_p6)   ;;  %v2857_v22 = vld [vmem:[%s3714_s3 + $0x28] sm:$0xff] (!%p297_p6)  }
   0xd   : > { %2502 = vmatprep.subr.bf16.mxu0 (!%p297_p6), %v2851_v1  ;;  %2553 = vmatpush3.bf16.msra.mxu1 (!%p297_p6), %v2852_v2 }
   0xe   : > { %2554 = vmatprep.subr.bf16.mxu1 (!%p297_p6), %v2853_v3 }
  0x10   : > { %2503 = vmatpush3.bf16.msra.mxu0 (!%p297_p6), %v2851_v1 }
  0x11   : > { %2555 = vmatpush3.bf16.msra.mxu1 (!%p297_p6), %v2853_v3 }
  0x12   : > { %s341_s27 = scalar_select %p340_p7, %s3051_s20, 74  ;;  %2556 = vmatprep.subr.bf16.mxu1 %v2854_v4 }
  0x13   : > { %s1909_s30 = ssub.s32 (%p3043_p4), 75, %s3051_s20  ;;  %s2377_s14 = smul.u32 (%p3043_p4), 384, %s3031_s12 }
  0x14   : > { %s2310_s28 = sshll.u32 %s341_s27, 3  ;;  %s2760_s27 = smul.u32 384, %s332_s26 }
  0x15   : > { %s3070_s18 = scalar_lea.vmem %s3711_s0, %s2310_s28  ;;  %2557 = vmatpush3.bf16.msra.mxu1 %v2854_v4  ;;  %p1910_p8 = scmp.lt.s32.totalorder (%p3043_p4), %s1909_s30, 48 }
  0x16   : > { %v355_v5 = vld [vmem:[%s3070_s18] sm:$0xff]  ;;  %v356_v6 = vld [vmem:[%s3070_s18 + $0x8] sm:$0xff]  ;;  %v357_v7 = vld [vmem:[%s3070_s18 + $0x10] sm:$0xff]  ;;  %2558 = vmatprep.subr.bf16.mxu1 %v2855_v14  ;;  %s3398_s11 = scalar_lea.vmem [#allocation2], %s2760_s27   ;;  %s3549_s19 = scalar_lea.vmem (%p3043_p4), %s3720_s9, %s2377_s14  }
  0x17   : > { %v403_v8 = vpack.c.bf16 %v356_v6, %v355_v5  ;;  %v358_v9 = vld [vmem:[%s3070_s18 + $0x18] sm:$0xff]  ;;  %v359_v10 = vld [vmem:[%s3070_s18 + $0x20] sm:$0xff]  ;;  %v360_v11 = vld [vmem:[%s3070_s18 + $0x28] sm:$0xff] }
  0x18   : > { %v404_v12 = vpack.c.bf16 %v358_v9, %v357_v7  ;;  %v405_v13 = vpack.c.bf16 %v360_v11, %v359_v10  ;;  %v361_v15 = vld [vmem:[%s3070_s18 + $0x30] sm:$0xff]  ;;  %v362_v16 = vld [vmem:[%s3070_s18 + $0x38] sm:$0xff]  ;;  %v363_v17 = vld [vmem:[%s3070_s18 + $0x40] sm:$0xff] }
  0x19   : > { %2504 = vmatprep.mubr.msk.bf16.mxu0 %vm450_vm0, %v403_v8  ;;  %v364_v18 = vld [vmem:[%s3070_s18 + $0x48] sm:$0xff]  ;;  %v406_v20 = vpack.c.bf16 %v362_v16, %v361_v15  ;;  %2559 = vmatpush3.bf16.msra.mxu1 %v2855_v14  ;;  %v365_v23 = vld [vmem:[%s3070_s18 + $0x50] sm:$0xff]  ;;  %v366_v24 = vld [vmem:[%s3070_s18 + $0x58] sm:$0xff] }
  0x1a   : > { %2505 = vmatmul.mubr.msk.bf16.vlgmr.msra.gmra.mrb[0].mxu0 %vm450_vm0, %v404_v12  ;;  %v407_v21 = vpack.c.bf16 %v364_v18, %v363_v17  ;;  %2560 = vmatprep.subr.bf16.mxu1 %v2856_v19  ;;  %v367_v25 = vld [vmem:[%s3070_s18 + $0x60] sm:$0xff]  ;;  %v368_v26 = vld [vmem:[%s3070_s18 + $0x68] sm:$0xff]  ;;  %v408_v27 = vpack.c.bf16 %v366_v24, %v365_v23  ;;  %v369_v29 = vld [vmem:[%s3070_s18 + $0x70] sm:$0xff] }
  0x1b   : > { %2508 = vmatprep.mubr.msk.bf16.mxu0 %vm450_vm0, %v405_v13  ;;  %v409_v28 = vpack.c.bf16 %v368_v26, %v367_v25  ;;  %v370_v30 = vld [vmem:[%s3070_s18 + $0x78] sm:$0xff]  ;;  %v371_v31 = vld [vmem:[%s3070_s18 + $0x80] sm:$0xff]  ;;  %v372_v32 = vld [vmem:[%s3070_s18 + $0x88] sm:$0xff] }
  0x1c   : > { %v410_v33 = vpack.c.bf16 %v370_v30, %v369_v29  ;;  %v411_v34 = vpack.c.bf16 %v372_v32, %v371_v31  ;;  %v373_v35 = vld [vmem:[%s3070_s18 + $0x90] sm:$0xff]  ;;  %v374_v36 = vld [vmem:[%s3070_s18 + $0x98] sm:$0xff]  ;;  %v375_v37 = vld [vmem:[%s3070_s18 + $0xa0] sm:$0xff] }
  0x1d   : > { %2561 = vmatpush3.bf16.msra.mxu1 %v2856_v19  ;;  %v376_v38 = vld [vmem:[%s3070_s18 + $0xa8] sm:$0xff]  ;;  %v412_v39 = vpack.c.bf16 %v374_v36, %v373_v35  ;;  %v377_v41 = vld [vmem:[%s3070_s18 + $0xb0] sm:$0xff]  ;;  %v378_v42 = vld [vmem:[%s3070_s18 + $0xb8] sm:$0xff] }
  0x1e   : > { %2562 = vmatprep.subr.bf16.mxu1 %v2857_v22  ;;  %v413_v40 = vpack.c.bf16 %v376_v38, %v375_v37  ;;  %v379_v43 = vld [vmem:[%s3070_s18 + $0xc0] sm:$0xff]  ;;  %v380_v44 = vld [vmem:[%s3070_s18 + $0xc8] sm:$0xff]  ;;  %v414_v45 = vpack.c.bf16 %v378_v42, %v377_v41  ;;  %v381_v47 = vld [vmem:[%s3070_s18 + $0xd0] sm:$0xff] }
  0x1f   : > { %v415_v46 = vpack.c.bf16 %v380_v44, %v379_v43  ;;  %v382_v48 = vld [vmem:[%s3070_s18 + $0xd8] sm:$0xff]  ;;  %v383_v49 = vld [vmem:[%s3070_s18 + $0xe0] sm:$0xff]  ;;  %v384_v50 = vld [vmem:[%s3070_s18 + $0xe8] sm:$0xff] }
  0x20   : > { %v416_v51 = vpack.c.bf16 %v382_v48, %v381_v47  ;;  %v417_v52 = vpack.c.bf16 %v384_v50, %v383_v49  ;;  %v385_v53 = vld [vmem:[%s3070_s18 + $0xf0] sm:$0xff]  ;;  %v386_v54 = vld [vmem:[%s3070_s18 + $0xf8] sm:$0xff]  ;;  %v387_v55 = vld [vmem:[%s3070_s18 + $0x100] sm:$0xff] }
  0x21   : > { %2563 = vmatpush3.bf16.msra.mxu1 %v2857_v22  ;;  %v388_v56 = vld [vmem:[%s3070_s18 + $0x108] sm:$0xff]  ;;  %v418_v57 = vpack.c.bf16 %v386_v54, %v385_v53  ;;  %v389_v59 = vld [vmem:[%s3070_s18 + $0x110] sm:$0xff]  ;;  %v390_v60 = vld [vmem:[%s3070_s18 + $0x118] sm:$0xff] }
  0x22   : > { %2509 = vmatmul.mubr.msk.bf16.gmra.mrb[4].mxu0 %vm450_vm0, %v406_v20  ;;  %v419_v58 = vpack.c.bf16 %v388_v56, %v387_v55  ;;  %v391_v61 = vld [vmem:[%s3070_s18 + $0x120] sm:$0xff]  ;;  %v392_v62 = vld [vmem:[%s3070_s18 + $0x128] sm:$0xff]  ;;  %v420_v63 = vpack.c.bf16 %v390_v60, %v389_v59  ;;  %v393_v1 = vld [vmem:[%s3070_s18 + $0x130] sm:$0xff] }
  0x23   : > { %2512 = vmatprep.mubr.msk.bf16.mxu0 %vm450_vm0, %v407_v21  ;;  %v421_v0 = vpack.c.bf16 %v392_v62, %v391_v61  ;;  %v394_v2 = vld [vmem:[%s3070_s18 + $0x138] sm:$0xff]  ;;  %v395_v3 = vld [vmem:[%s3070_s18 + $0x140] sm:$0xff]  ;;  %v396_v4 = vld [vmem:[%s3070_s18 + $0x148] sm:$0xff] }
  0x24   : > { %v422_v5 = vpack.c.bf16 %v394_v2, %v393_v1  ;;  %v423_v6 = vpack.c.bf16 %v396_v4, %v395_v3  ;;  %v397_v7 = vld [vmem:[%s3070_s18 + $0x150] sm:$0xff]  ;;  %v398_v8 = vld [vmem:[%s3070_s18 + $0x158] sm:$0xff]  ;;  %v399_v9 = vld [vmem:[%s3070_s18 + $0x160] sm:$0xff] }
  0x25   : > { %v400_v10 = vld [vmem:[%s3070_s18 + $0x168] sm:$0xff]  ;;  %v424_v11 = vpack.c.bf16 %v398_v8, %v397_v7  ;;  %v401_v13 = vld [vmem:[%s3070_s18 + $0x170] sm:$0xff]  ;;  %v402_v14 = vld [vmem:[%s3070_s18 + $0x178] sm:$0xff] }
  0x26   : > { %v425_v12 = vpack.c.bf16 %v400_v10, %v399_v9  ;;  %v426_v15 = vpack.c.bf16 %v402_v14, %v401_v13  ;;  %v2858_v16 = vld [vmem:[%s3714_s3 + $0x30] sm:$0xff]   ;;  %v2859_v17 = vld [vmem:[%s3714_s3 + $0x38] sm:$0xff]   ;;  %v2860_v18 = vld [vmem:[%s3716_s5] sm:$0xff]  }
  0x27   : > { %2564 = vmatprep.subr.bf16.mxu1 %v2858_v16  ;;  %v2861_v19 = vld [vmem:[%s3716_s5 + $0x8] sm:$0xff]   ;;  %2616 = vmatprep.subr.bf16.mxu0 %v2860_v18  ;;  %v2862_v20 = vld [vmem:[%s3716_s5 + $0x10] sm:$0xff]   ;;  %v2863_v21 = vld [vmem:[%s3716_s5 + $0x18] sm:$0xff]  }
  0x28   : > { %2565 = vmatpush3.bf16.msra.mxu1 %v2858_v16  ;;  %2617 = vmatpush3.bf16.msra.mxu0 %v2860_v18  ;;  %v2864_v22 = vld [vmem:[%s3716_s5 + $0x20] sm:$0xff]   ;;  %v2865_v23 = vld [vmem:[%s3716_s5 + $0x28] sm:$0xff]   ;;  %v2866_v24 = vld [vmem:[%s3716_s5 + $0x30] sm:$0xff]  }
  0x29   : > { %2566 = vmatprep.subr.bf16.mxu1 %v2859_v17  ;;  %2618 = vmatprep.subr.bf16.mxu0 %v2861_v19  ;;  %v2867_v25 = vld [vmem:[%s3716_s5 + $0x38] sm:$0xff]   ;;  %v3186_v26 = vld [vmem:[%s3713_s2] ss:$0 sm:$0xff] }
  0x2a   : > { %2513 = vmatmul.mubr.msk.bf16.gmra.mrb[8].mxu0 %vm450_vm0, %v408_v27 }
  0x2b   : > { %2516 = vmatprep.mubr.msk.bf16.mxu0 %vm450_vm0, %v409_v28 }
  0x2c   : > { %2567 = vmatpush3.bf16.msra.mxu1 %v2859_v17  ;;  %2619 = vmatpush3.bf16.msra.mxu0 %v2861_v19 }
  0x2d   : > { %2620 = vmatprep.subr.bf16.mxu0 %v2862_v20 }
  0x30   : > { %2621 = vmatpush3.bf16.msra.mxu0 %v2862_v20 }
  0x31   : > { %2622 = vmatprep.subr.bf16.mxu0 %v2863_v21 }
  0x32   : > { %2517 = vmatmul.mubr.msk.bf16.gmra.mrb[12].mxu0 %vm450_vm0, %v410_v33 }
  0x33   : > { %2520 = vmatprep.mubr.msk.bf16.mxu0 %vm450_vm0, %v411_v34 }
  0x34   : > { %2623 = vmatpush3.bf16.msra.mxu0 %v2863_v21 }
  0x35   : > { %2624 = vmatprep.subr.bf16.mxu0 %v2864_v22 }
  0x38   : > { %2625 = vmatpush3.bf16.msra.mxu0 %v2864_v22 }
  0x39   : > { %2626 = vmatprep.subr.bf16.mxu0 %v2865_v23 }
  0x3a   : > { %2521 = vmatmul.mubr.msk.bf16.gmra.mrb[16].mxu0 %vm450_vm0, %v412_v39 }
  0x3b   : > { %2524 = vmatprep.mubr.msk.bf16.mxu0 %vm450_vm0, %v413_v40 }
  0x3c   : > { %2627 = vmatpush3.bf16.msra.mxu0 %v2865_v23 }
  0x3d   : > { %2628 = vmatprep.subr.bf16.mxu0 %v2866_v24 }
  0x40   : > { %2629 = vmatpush3.bf16.msra.mxu0 %v2866_v24 }
  0x41   : > { %2630 = vmatprep.subr.bf16.mxu0 %v2867_v25 }
  0x42   : > { %2525 = vmatmul.mubr.msk.bf16.gmra.mrb[20].mxu0 %vm450_vm0, %v414_v45 }
  0x43   : > { %2528 = vmatprep.mubr.msk.bf16.mxu0 %vm450_vm0, %v415_v46 }
  0x44   : > { %2631 = vmatpush3.bf16.msra.mxu0 %v2867_v25 }
  0x4a   : > { %2529 = vmatmul.mubr.msk.bf16.gmra.mrb[24].mxu0 %vm450_vm0, %v416_v51 }
  0x4b   : > { %2532 = vmatprep.mubr.msk.bf16.mxu0 %vm450_vm0, %v417_v52 }
  0x52   : > { %2533 = vmatmul.mubr.msk.bf16.gmra.mrb[28].mxu0 %vm450_vm0, %v418_v57 }
  0x53   : > { %2536 = vmatprep.mubr.msk.bf16.mxu0 %vm450_vm0, %v419_v58 }
  0x5a   : > { %2537 = vmatmul.mubr.msk.bf16.gmra.mrb[32].mxu0 %vm450_vm0, %v420_v63 }
  0x5b   : > { %2540 = vmatprep.mubr.msk.bf16.mxu0 %vm450_vm0, %v421_v0 }
  0x62   : > { %2541 = vmatmul.mubr.msk.bf16.gmra.mrb[36].mxu0 %vm450_vm0, %v422_v5 }
  0x63   : > { %2544 = vmatprep.mubr.msk.bf16.mxu0 %vm450_vm0, %v423_v6 }
  0x6a   : > { %2545 = vmatmul.mubr.msk.bf16.gmra.mrb[40].mxu0 %vm450_vm0, %v424_v11 }
  0x6b   : > { %2548 = vmatprep.mubr.msk.bf16.mxu0 %vm450_vm0, %v425_v12 }
  0x72   : > { %2549 = vmatmul.mubr.msk.bf16.gmra.mrb[44].mxu0 %vm450_vm0, %v426_v15 }
  0xed   : > { %v2506_v27 = vpop.f32.mrb[0].mxu0 }
  0xee   : > { %v566_v28 = vadd.f32 %v2506_v27, %v3186_v26  ;;  %v557_v29 = vpop.f32.mrb[1].mxu0 }
  0xef   : > { %v558_v30 = vadd.f32 %v3186_v26, %v557_v29  ;;  %v2507_v31 = vpop.f32.mrb[2].mxu0 }
  0xf0   : > { %v569_v32 = vadd.f32 %v2507_v31, %v3186_v26  ;;  %v560_v33 = vpop.f32.mrb[3].mxu0  ;;  %v750_v35 = vmax.f32 %v566_v28, 0.0 }
  0xf1   : > { %v561_v34 = vadd.f32 %v3186_v26, %v560_v33  ;;  %v748_v37 = vmax.f32 %v558_v30, 0.0 }
  0xf2   : > { %v751_v36 = vmax.f32 %v569_v32, 0.0 }
  0xf3   : > { %v749_v38 = vmax.f32 %v561_v34, 0.0 }
  0xf4   : > { %v797_v39 = vpack.c.bf16 %v751_v36, %v750_v35 }
  0xf5   : > { %v2510_v40 = vpop.f32.mrb[4].mxu0  ;;  %v796_v41 = vpack.c.bf16 %v749_v38, %v748_v37 }
  0xf6   : > { %v582_v42 = vadd.f32 %v2510_v40, %v3186_v26  ;;  %v573_v43 = vpop.f32.mrb[5].mxu0 }
  0xf7   : > { %v574_v44 = vadd.f32 %v3186_v26, %v573_v43  ;;  %v2511_v45 = vpop.f32.mrb[6].mxu0  ;;  %2568 = vmatprep.mubr.bf16.mxu1 %v796_v41 }
  0xf8   : > { %v585_v46 = vadd.f32 %v2511_v45, %v3186_v26  ;;  %v576_v47 = vpop.f32.mrb[7].mxu0  ;;  %2569 = vmatmul.mubr.bf16.vlgmr.msra.gmra.mrb[0].mxu1 %v797_v39  ;;  %v754_v49 = vmax.f32 %v582_v42, 0.0 }
  0xf9   : > { %v577_v48 = vadd.f32 %v3186_v26, %v576_v47  ;;  %v752_v51 = vmax.f32 %v574_v44, 0.0 }
  0xfa   : > { %v755_v50 = vmax.f32 %v585_v46, 0.0 }
  0xfb   : > { %v753_v52 = vmax.f32 %v577_v48, 0.0 }
  0xfc   : > { %v799_v53 = vpack.c.bf16 %v755_v50, %v754_v49 }
  0xfd   : > { %v798_v54 = vpack.c.bf16 %v753_v52, %v752_v51  ;;  %v2514_v55 = vpop.f32.mrb[8].mxu0 }
  0xfe   : > { %v598_v56 = vadd.f32 %v2514_v55, %v3186_v26  ;;  %v589_v57 = vpop.f32.mrb[9].mxu0 }
  0xff   : > { %v590_v58 = vadd.f32 %v3186_v26, %v589_v57  ;;  %v2515_v59 = vpop.f32.mrb[10].mxu0  ;;  %2572 = vmatprep.mubr.bf16.mxu1 %v798_v54 }
 0x100   : > { %v601_v60 = vadd.f32 %v2515_v59, %v3186_v26  ;;  %v592_v61 = vpop.f32.mrb[11].mxu0  ;;  %2573 = vmatmul.mubr.bf16.gmra.mrb[4].mxu1 %v799_v53  ;;  %v758_v63 = vmax.f32 %v598_v56, 0.0 }
 0x101   : > { %v593_v62 = vadd.f32 %v3186_v26, %v592_v61  ;;  %v756_v1 = vmax.f32 %v590_v58, 0.0 }
 0x102   : > { %v759_v0 = vmax.f32 %v601_v60, 0.0 }
 0x103   : > { %v757_v2 = vmax.f32 %v593_v62, 0.0 }
 0x104   : > { %v801_v3 = vpack.c.bf16 %v759_v0, %v758_v63 }
 0x105   : > { %v800_v4 = vpack.c.bf16 %v757_v2, %v756_v1  ;;  %v2518_v5 = vpop.f32.mrb[12].mxu0 }
 0x106   : > { %v614_v6 = vadd.f32 %v2518_v5, %v3186_v26  ;;  %v605_v7 = vpop.f32.mrb[13].mxu0 }
 0x107   : > { %v606_v8 = vadd.f32 %v3186_v26, %v605_v7  ;;  %v2519_v9 = vpop.f32.mrb[14].mxu0  ;;  %2576 = vmatprep.mubr.bf16.mxu1 %v800_v4 }
 0x108   : > { %v617_v10 = vadd.f32 %v2519_v9, %v3186_v26  ;;  %v608_v11 = vpop.f32.mrb[15].mxu0  ;;  %2577 = vmatmul.mubr.bf16.gmra.mrb[8].mxu1 %v801_v3  ;;  %v762_v13 = vmax.f32 %v614_v6, 0.0 }
 0x109   : > { %v609_v12 = vadd.f32 %v3186_v26, %v608_v11  ;;  %v760_v15 = vmax.f32 %v606_v8, 0.0 }
 0x10a   : > { %v763_v14 = vmax.f32 %v617_v10, 0.0 }
 0x10b   : > { %v761_v16 = vmax.f32 %v609_v12, 0.0 }
 0x10c   : > { %v803_v17 = vpack.c.bf16 %v763_v14, %v762_v13 }
 0x10d   : > { %v802_v18 = vpack.c.bf16 %v761_v16, %v760_v15  ;;  %v2522_v19 = vpop.f32.mrb[16].mxu0 }
 0x10e   : > { %v630_v20 = vadd.f32 %v2522_v19, %v3186_v26  ;;  %v621_v21 = vpop.f32.mrb[17].mxu0 }
 0x10f   : > { %v622_v22 = vadd.f32 %v3186_v26, %v621_v21  ;;  %v2523_v23 = vpop.f32.mrb[18].mxu0  ;;  %2580 = vmatprep.mubr.bf16.mxu1 %v802_v18 }
 0x110   : > { %v633_v24 = vadd.f32 %v2523_v23, %v3186_v26  ;;  %v624_v25 = vpop.f32.mrb[19].mxu0  ;;  %2581 = vmatmul.mubr.bf16.gmra.mrb[12].mxu1 %v803_v17  ;;  %v766_v28 = vmax.f32 %v630_v20, 0.0 }
 0x111   : > { %v625_v27 = vadd.f32 %v3186_v26, %v624_v25  ;;  %v764_v30 = vmax.f32 %v622_v22, 0.0 }
 0x112   : > { %v767_v29 = vmax.f32 %v633_v24, 0.0 }
 0x113   : > { %v765_v31 = vmax.f32 %v625_v27, 0.0 }
 0x114   : > { %v805_v32 = vpack.c.bf16 %v767_v29, %v766_v28 }
 0x115   : > { %v804_v33 = vpack.c.bf16 %v765_v31, %v764_v30  ;;  %v2526_v34 = vpop.f32.mrb[20].mxu0 }
 0x116   : > { %v646_v35 = vadd.f32 %v2526_v34, %v3186_v26  ;;  %v637_v36 = vpop.f32.mrb[21].mxu0 }
 0x117   : > { %v638_v37 = vadd.f32 %v3186_v26, %v637_v36  ;;  %v2527_v38 = vpop.f32.mrb[22].mxu0  ;;  %2584 = vmatprep.mubr.bf16.mxu1 %v804_v33 }
 0x118   : > { %v649_v39 = vadd.f32 %v2527_v38, %v3186_v26  ;;  %v640_v40 = vpop.f32.mrb[23].mxu0  ;;  %2585 = vmatmul.mubr.bf16.gmra.mrb[16].mxu1 %v805_v32  ;;  %v770_v42 = vmax.f32 %v646_v35, 0.0 }
 0x119   : > { %v641_v41 = vadd.f32 %v3186_v26, %v640_v40  ;;  %v768_v44 = vmax.f32 %v638_v37, 0.0 }
 0x11a   : > { %v771_v43 = vmax.f32 %v649_v39, 0.0 }
 0x11b   : > { %v769_v45 = vmax.f32 %v641_v41, 0.0 }
 0x11c   : > { %v807_v46 = vpack.c.bf16 %v771_v43, %v770_v42 }
 0x11d   : > { %v806_v47 = vpack.c.bf16 %v769_v45, %v768_v44  ;;  %v2530_v48 = vpop.f32.mrb[24].mxu0 }
 0x11e   : > { %v662_v49 = vadd.f32 %v2530_v48, %v3186_v26  ;;  %v653_v50 = vpop.f32.mrb[25].mxu0 }
 0x11f   : > { %v654_v51 = vadd.f32 %v3186_v26, %v653_v50  ;;  %v2531_v52 = vpop.f32.mrb[26].mxu0  ;;  %2588 = vmatprep.mubr.bf16.mxu1 %v806_v47 }
 0x120   : > { %v665_v53 = vadd.f32 %v2531_v52, %v3186_v26  ;;  %v656_v54 = vpop.f32.mrb[27].mxu0  ;;  %2589 = vmatmul.mubr.bf16.gmra.mrb[20].mxu1 %v807_v46  ;;  %v774_v56 = vmax.f32 %v662_v49, 0.0 }
 0x121   : > { %v657_v55 = vadd.f32 %v3186_v26, %v656_v54  ;;  %v772_v58 = vmax.f32 %v654_v51, 0.0 }
 0x122   : > { %v775_v57 = vmax.f32 %v665_v53, 0.0 }
 0x123   : > { %v773_v59 = vmax.f32 %v657_v55, 0.0 }
 0x124   : > { %v809_v60 = vpack.c.bf16 %v775_v57, %v774_v56 }
 0x125   : > { %v808_v61 = vpack.c.bf16 %v773_v59, %v772_v58  ;;  %v2534_v62 = vpop.f32.mrb[28].mxu0 }
 0x126   : > { %v678_v63 = vadd.f32 %v2534_v62, %v3186_v26  ;;  %v669_v0 = vpop.f32.mrb[29].mxu0 }
 0x127   : > { %v670_v1 = vadd.f32 %v3186_v26, %v669_v0  ;;  %v2535_v2 = vpop.f32.mrb[30].mxu0  ;;  %2592 = vmatprep.mubr.bf16.mxu1 %v808_v61 }
 0x128   : > { %v681_v3 = vadd.f32 %v2535_v2, %v3186_v26  ;;  %v672_v4 = vpop.f32.mrb[31].mxu0  ;;  %2593 = vmatmul.mubr.bf16.gmra.mrb[24].mxu1 %v809_v60  ;;  %v778_v6 = vmax.f32 %v678_v63, 0.0 }
 0x129   : > { %v673_v5 = vadd.f32 %v3186_v26, %v672_v4  ;;  %v776_v8 = vmax.f32 %v670_v1, 0.0 }
 0x12a   : > { %v779_v7 = vmax.f32 %v681_v3, 0.0 }
 0x12b   : > { %v777_v9 = vmax.f32 %v673_v5, 0.0  ;;  %v2868_v5 = vld [vmem:[%s3718_s7] sm:$0xff]  }
 0x12c   : > { %v811_v10 = vpack.c.bf16 %v779_v7, %v778_v6  ;;  %2744 = vmatprep.subr.bf16.mxu1 %v2868_v5  ;;  %v2869_v6 = vld [vmem:[%s3718_s7 + $0x8] sm:$0xff]   ;;  %2680 = vmatprep.subr.bf16.mxu0 %v2868_v5  ;;  %v3248_v7 = vld [vmem:[%s3718_s7 + $0x18] sm:$0xff]  }
 0x12d   : > { %v810_v11 = vpack.c.bf16 %v777_v9, %v776_v8  ;;  %v2538_v12 = vpop.f32.mrb[32].mxu0  ;;  %2752 = vmatpush3.bf16.msra.mxu1 %v2868_v5  ;;  %v3254_v8 = vld [vmem:[%s3718_s7 + $0x20] sm:$0xff]   ;;  %v3261_v9 = vld [vmem:[%s3718_s7 + $0x28] sm:$0xff]  }
 0x12e   : > { %v694_v13 = vadd.f32 %v2538_v12, %v3186_v26  ;;  %v685_v14 = vpop.f32.mrb[33].mxu0  ;;  %2745 = vmatprep.subr.bf16.mxu1 %v2869_v6 }
 0x12f   : > { %v686_v15 = vadd.f32 %v3186_v26, %v685_v14  ;;  %v2539_v16 = vpop.f32.mrb[34].mxu0  ;;  %2596 = vmatprep.mubr.bf16.mxu1 %v810_v11  ;;  %v3275_v11 = vld [vmem:[%s3715_s4] ss:$0 sm:$0xff] }
 0x130   : > { %v697_v17 = vadd.f32 %v2539_v16, %v3186_v26  ;;  %v688_v18 = vpop.f32.mrb[35].mxu0  ;;  %2597 = vmatmul.mubr.bf16.gmra.mrb[28].mxu1 %v811_v10  ;;  %v782_v20 = vmax.f32 %v694_v13, 0.0  ;;  %v3268_v10 = vld [vmem:[%s3718_s7 + $0x30] sm:$0xff]  }
 0x131   : > { %v689_v19 = vadd.f32 %v3186_v26, %v688_v18  ;;  %v780_v22 = vmax.f32 %v686_v15, 0.0  ;;  %2753 = vmatpush3.bf16.msra.mxu1 %v2869_v6 }
 0x132   : > { %v783_v21 = vmax.f32 %v697_v17, 0.0 }
 0x133   : > { %v781_v23 = vmax.f32 %v689_v19, 0.0 }
 0x134   : > { %v813_v24 = vpack.c.bf16 %v783_v21, %v782_v20 }
 0x135   : > { %v812_v25 = vpack.c.bf16 %v781_v23, %v780_v22  ;;  %v2542_v27 = vpop.f32.mrb[36].mxu0 }
 0x136   : > { %v710_v28 = vadd.f32 %v2542_v27, %v3186_v26  ;;  %v701_v29 = vpop.f32.mrb[37].mxu0 }
 0x137   : > { %v702_v30 = vadd.f32 %v3186_v26, %v701_v29  ;;  %v2543_v31 = vpop.f32.mrb[38].mxu0  ;;  %2600 = vmatprep.mubr.bf16.mxu1 %v812_v25 }
 0x138   : > { %v713_v32 = vadd.f32 %v2543_v31, %v3186_v26  ;;  %v704_v33 = vpop.f32.mrb[39].mxu0  ;;  %2601 = vmatmul.mubr.bf16.gmra.mrb[32].mxu1 %v813_v24  ;;  %v786_v35 = vmax.f32 %v710_v28, 0.0 }
 0x139   : > { %v705_v34 = vadd.f32 %v3186_v26, %v704_v33  ;;  %v784_v37 = vmax.f32 %v702_v30, 0.0 }
 0x13a   : > { %v787_v36 = vmax.f32 %v713_v32, 0.0 }
 0x13b   : > { %v785_v38 = vmax.f32 %v705_v34, 0.0 }
 0x13c   : > { %v815_v39 = vpack.c.bf16 %v787_v36, %v786_v35 }
 0x13d   : > { %v814_v40 = vpack.c.bf16 %v785_v38, %v784_v37  ;;  %v2546_v41 = vpop.f32.mrb[40].mxu0 }
 0x13e   : > { %v726_v42 = vadd.f32 %v2546_v41, %v3186_v26  ;;  %v717_v43 = vpop.f32.mrb[41].mxu0 }
 0x13f   : > { %v718_v44 = vadd.f32 %v3186_v26, %v717_v43  ;;  %v2547_v45 = vpop.f32.mrb[42].mxu0  ;;  %2604 = vmatprep.mubr.bf16.mxu1 %v814_v40 }
 0x140   : > { %v729_v46 = vadd.f32 %v2547_v45, %v3186_v26  ;;  %v720_v47 = vpop.f32.mrb[43].mxu0  ;;  %2605 = vmatmul.mubr.bf16.gmra.mrb[36].mxu1 %v815_v39  ;;  %v790_v49 = vmax.f32 %v726_v42, 0.0 }
 0x141   : > { %v721_v48 = vadd.f32 %v3186_v26, %v720_v47  ;;  %v788_v51 = vmax.f32 %v718_v44, 0.0 }
 0x142   : > { %v791_v50 = vmax.f32 %v729_v46, 0.0 }
 0x143   : > { %v789_v52 = vmax.f32 %v721_v48, 0.0 }
 0x144   : > { %v817_v53 = vpack.c.bf16 %v791_v50, %v790_v49 }
 0x145   : > { %v816_v54 = vpack.c.bf16 %v789_v52, %v788_v51  ;;  %v2550_v55 = vpop.f32.mrb[44].mxu0 }
 0x146   : > { %v742_v56 = vadd.f32 %v2550_v55, %v3186_v26  ;;  %v733_v57 = vpop.f32.mrb[45].mxu0 }
 0x147   : > { %v734_v58 = vadd.f32 %v3186_v26, %v733_v57  ;;  %v2551_v59 = vpop.f32.mrb[46].mxu0  ;;  %2608 = vmatprep.mubr.bf16.mxu1 %v816_v54 }
 0x148   : > { %v745_v60 = vadd.f32 %v2551_v59, %v3186_v26  ;;  %v736_v61 = vpop.f32.mrb[47].mxu0  ;;  %2609 = vmatmul.mubr.bf16.gmra.mrb[40].mxu1 %v817_v53  ;;  %v794_v63 = vmax.f32 %v742_v56, 0.0 }
 0x149   : > { %v737_v62 = vadd.f32 %v3186_v26, %v736_v61  ;;  %v792_v1 = vmax.f32 %v734_v58, 0.0  ;;  %v2870_v26 = vld [vmem:[%s3718_s7 + $0x10] sm:$0xff]  }
 0x14a   : > { %v795_v0 = vmax.f32 %v745_v60, 0.0  ;;  %2746 = vmatprep.subr.bf16.mxu1 %v2870_v26 }
 0x14b   : > { %v793_v2 = vmax.f32 %v737_v62, 0.0  ;;  %2754 = vmatpush3.bf16.msra.mxu1 %v2870_v26 }
 0x14c   : > { %v819_v3 = vpack.c.bf16 %v795_v0, %v794_v63  ;;  %2747 = vmatprep.subr.bf16.mxu1 %v3248_v7 }
 0x14d   : > { %v818_v4 = vpack.c.bf16 %v793_v2, %v792_v1 }
 0x14f   : > { %2612 = vmatprep.mubr.bf16.mxu1 %v818_v4  ;;  %2755 = vmatpush3.bf16.msra.mxu1 %v3248_v7 }
 0x150   : > { %2613 = vmatmul.mubr.bf16.gmra.mrb[44].mxu1 %v819_v3  ;;  %2748 = vmatprep.subr.bf16.mxu1 %v3254_v8 }
 0x153   : > { %2756 = vmatpush3.bf16.msra.mxu1 %v3254_v8 }
 0x154   : > { %2749 = vmatprep.subr.bf16.mxu1 %v3261_v9 }
 0x157   : > { %2757 = vmatpush3.bf16.msra.mxu1 %v3261_v9 }
 0x158   : > { %2750 = vmatprep.subr.bf16.mxu1 %v3268_v10 }
 0x15b   : > { %2758 = vmatpush3.bf16.msra.mxu1 %v3268_v10 }
 0x1cb   : > { %v2570_v12 = vpop.f32.mrb[0].mxu1 }
 0x1cc   : > { %v934_v13 = vadd.f32 %v2570_v12, %v3275_v11  ;;  %v925_v14 = vpop.f32.mrb[1].mxu1 }
 0x1cd   : > { %v926_v15 = vadd.f32 %v3275_v11, %v925_v14  ;;  %v2571_v16 = vpop.f32.mrb[2].mxu1 }
 0x1ce   : > { %v937_v17 = vadd.f32 %v2571_v16, %v3275_v11  ;;  %v928_v18 = vpop.f32.mrb[3].mxu1  ;;  %v1118_v20 = vmax.f32 %v934_v13, 0.0 }
 0x1cf   : > { %v929_v19 = vadd.f32 %v3275_v11, %v928_v18  ;;  %v1116_v22 = vmax.f32 %v926_v15, 0.0 }
 0x1d0   : > { %v1119_v21 = vmax.f32 %v937_v17, 0.0 }
 0x1d1   : > { %v1117_v23 = vmax.f32 %v929_v19, 0.0 }
 0x1d2   : > { %v1165_v24 = vpack.c.bf16 %v1119_v21, %v1118_v20 }
 0x1d3   : > { %v1164_v25 = vpack.c.bf16 %v1117_v23, %v1116_v22  ;;  %v2574_v27 = vpop.f32.mrb[4].mxu1 }
 0x1d4   : > { %v950_v28 = vadd.f32 %v2574_v27, %v3275_v11  ;;  %v941_v29 = vpop.f32.mrb[5].mxu1 }
 0x1d5   : > { %v942_v30 = vadd.f32 %v3275_v11, %v941_v29  ;;  %v2575_v31 = vpop.f32.mrb[6].mxu1  ;;  %2632 = vmatprep.mubr.bf16.mxu0 %v1164_v25 }
 0x1d6   : > { %v953_v32 = vadd.f32 %v2575_v31, %v3275_v11  ;;  %v944_v33 = vpop.f32.mrb[7].mxu1  ;;  %2633 = vmatmul.mubr.bf16.vlgmr.msra.gmra.mrb[48].mxu0 %v1165_v24  ;;  %v1122_v35 = vmax.f32 %v950_v28, 0.0 }
 0x1d7   : > { %v945_v34 = vadd.f32 %v3275_v11, %v944_v33  ;;  %2681 = vmatpush3.bf16.msra.mxu0 %v2868_v5  ;;  %v1120_v37 = vmax.f32 %v942_v30, 0.0 }
 0x1d8   : > { %v1123_v36 = vmax.f32 %v953_v32, 0.0  ;;  %2682 = vmatprep.subr.bf16.mxu0 %v2869_v6 }
 0x1d9   : > { %v1121_v38 = vmax.f32 %v945_v34, 0.0 }
 0x1da   : > { %v1167_v39 = vpack.c.bf16 %v1123_v36, %v1122_v35 }
 0x1db   : > { %v1166_v40 = vpack.c.bf16 %v1121_v38, %v1120_v37  ;;  %v2578_v41 = vpop.f32.mrb[8].mxu1  ;;  %2683 = vmatpush3.bf16.msra.mxu0 %v2869_v6 }
 0x1dc   : > { %v966_v42 = vadd.f32 %v2578_v41, %v3275_v11  ;;  %v957_v43 = vpop.f32.mrb[9].mxu1  ;;  %2684 = vmatprep.subr.bf16.mxu0 %v2870_v26 }
 0x1dd   : > { %v958_v44 = vadd.f32 %v3275_v11, %v957_v43  ;;  %v2579_v45 = vpop.f32.mrb[10].mxu1  ;;  %2636 = vmatprep.mubr.bf16.mxu0 %v1166_v40 }
 0x1de   : > { %v969_v46 = vadd.f32 %v2579_v45, %v3275_v11  ;;  %v960_v47 = vpop.f32.mrb[11].mxu1  ;;  %2637 = vmatmul.mubr.bf16.gmra.mrb[52].mxu0 %v1167_v39  ;;  %v1126_v49 = vmax.f32 %v966_v42, 0.0 }
 0x1df   : > { %v961_v48 = vadd.f32 %v3275_v11, %v960_v47  ;;  %2685 = vmatpush3.bf16.msra.mxu0 %v2870_v26  ;;  %v1124_v51 = vmax.f32 %v958_v44, 0.0 }
 0x1e0   : > { %v1127_v50 = vmax.f32 %v969_v46, 0.0  ;;  %2686 = vmatprep.subr.bf16.mxu0 %v3248_v7 }
 0x1e1   : > { %v1125_v52 = vmax.f32 %v961_v48, 0.0 }
 0x1e2   : > { %v1169_v53 = vpack.c.bf16 %v1127_v50, %v1126_v49 }
 0x1e3   : > { %v1168_v54 = vpack.c.bf16 %v1125_v52, %v1124_v51  ;;  %v2582_v55 = vpop.f32.mrb[12].mxu1  ;;  %2687 = vmatpush3.bf16.msra.mxu0 %v3248_v7 }
 0x1e4   : > { %v982_v56 = vadd.f32 %v2582_v55, %v3275_v11  ;;  %v973_v57 = vpop.f32.mrb[13].mxu1  ;;  %2688 = vmatprep.subr.bf16.mxu0 %v3254_v8 }
 0x1e5   : > { %v974_v58 = vadd.f32 %v3275_v11, %v973_v57  ;;  %v2583_v59 = vpop.f32.mrb[14].mxu1  ;;  %2640 = vmatprep.mubr.bf16.mxu0 %v1168_v54 }
 0x1e6   : > { %v985_v60 = vadd.f32 %v2583_v59, %v3275_v11  ;;  %v976_v61 = vpop.f32.mrb[15].mxu1  ;;  %2641 = vmatmul.mubr.bf16.gmra.mrb[56].mxu0 %v1169_v53  ;;  %v1130_v63 = vmax.f32 %v982_v56, 0.0 }
 0x1e7   : > { %v977_v62 = vadd.f32 %v3275_v11, %v976_v61  ;;  %2689 = vmatpush3.bf16.msra.mxu0 %v3254_v8  ;;  %v1128_v1 = vmax.f32 %v974_v58, 0.0 }
 0x1e8   : > { %v1131_v0 = vmax.f32 %v985_v60, 0.0  ;;  %2690 = vmatprep.subr.bf16.mxu0 %v3261_v9 }
 0x1e9   : > { %v1129_v2 = vmax.f32 %v977_v62, 0.0 }
 0x1ea   : > { %v1171_v3 = vpack.c.bf16 %v1131_v0, %v1130_v63 }
 0x1eb   : > { %v1170_v4 = vpack.c.bf16 %v1129_v2, %v1128_v1  ;;  %v2586_v5 = vpop.f32.mrb[16].mxu1  ;;  %2691 = vmatpush3.bf16.msra.mxu0 %v3261_v9 }
 0x1ec   : > { %v998_v6 = vadd.f32 %v2586_v5, %v3275_v11  ;;  %v989_v26 = vpop.f32.mrb[17].mxu1  ;;  %2692 = vmatprep.subr.bf16.mxu0 %v3268_v10 }
 0x1ed   : > { %v990_v7 = vadd.f32 %v3275_v11, %v989_v26  ;;  %v2587_v12 = vpop.f32.mrb[18].mxu1  ;;  %2644 = vmatprep.mubr.bf16.mxu0 %v1170_v4 }
 0x1ee   : > { %v1001_v8 = vadd.f32 %v2587_v12, %v3275_v11  ;;  %v992_v13 = vpop.f32.mrb[19].mxu1  ;;  %2645 = vmatmul.mubr.bf16.gmra.mrb[60].mxu0 %v1171_v3  ;;  %v1134_v15 = vmax.f32 %v998_v6, 0.0 }
 0x1ef   : > { %v993_v14 = vadd.f32 %v3275_v11, %v992_v13  ;;  %2693 = vmatpush3.bf16.msra.mxu0 %v3268_v10  ;;  %v1132_v9 = vmax.f32 %v990_v7, 0.0 }
 0x1f0   : > { %v1135_v16 = vmax.f32 %v1001_v8, 0.0 }
 0x1f1   : > { %v1133_v17 = vmax.f32 %v993_v14, 0.0 }
 0x1f2   : > { %v1173_v18 = vpack.c.bf16 %v1135_v16, %v1134_v15 }
 0x1f3   : > { %v1172_v19 = vpack.c.bf16 %v1133_v17, %v1132_v9  ;;  %v2590_v20 = vpop.f32.mrb[20].mxu1 }
 0x1f4   : > { %v1014_v21 = vadd.f32 %v2590_v20, %v3275_v11  ;;  %v1005_v22 = vpop.f32.mrb[21].mxu1 }
 0x1f5   : > { %v1006_v23 = vadd.f32 %v3275_v11, %v1005_v22  ;;  %v2591_v24 = vpop.f32.mrb[22].mxu1  ;;  %2648 = vmatprep.mubr.bf16.mxu0 %v1172_v19 }
 0x1f6   : > { %v1017_v25 = vadd.f32 %v2591_v24, %v3275_v11  ;;  %v1008_v27 = vpop.f32.mrb[23].mxu1  ;;  %2649 = vmatmul.mubr.bf16.gmra.mrb[64].mxu0 %v1173_v18  ;;  %v1138_v28 = vmax.f32 %v1014_v21, 0.0 }
 0x1f7   : > { %v1009_v10 = vadd.f32 %v3275_v11, %v1008_v27  ;;  %v1136_v30 = vmax.f32 %v1006_v23, 0.0 }
 0x1f8   : > { %v1139_v29 = vmax.f32 %v1017_v25, 0.0 }
 0x1f9   : > { %v1137_v31 = vmax.f32 %v1009_v10, 0.0 }
 0x1fa   : > { %v1175_v32 = vpack.c.bf16 %v1139_v29, %v1138_v28 }
 0x1fb   : > { %v1174_v33 = vpack.c.bf16 %v1137_v31, %v1136_v30  ;;  %v2594_v34 = vpop.f32.mrb[24].mxu1 }
 0x1fc   : > { %v1030_v35 = vadd.f32 %v2594_v34, %v3275_v11  ;;  %v1021_v36 = vpop.f32.mrb[25].mxu1 }
 0x1fd   : > { %v1022_v37 = vadd.f32 %v3275_v11, %v1021_v36  ;;  %v2595_v38 = vpop.f32.mrb[26].mxu1  ;;  %2652 = vmatprep.mubr.bf16.mxu0 %v1174_v33 }
 0x1fe   : > { %v1033_v39 = vadd.f32 %v2595_v38, %v3275_v11  ;;  %v1024_v40 = vpop.f32.mrb[27].mxu1  ;;  %2653 = vmatmul.mubr.bf16.gmra.mrb[68].mxu0 %v1175_v32  ;;  %v1142_v42 = vmax.f32 %v1030_v35, 0.0 }
 0x1ff   : > { %v1025_v41 = vadd.f32 %v3275_v11, %v1024_v40  ;;  %v1140_v44 = vmax.f32 %v1022_v37, 0.0 }
 0x200   : > { %v1143_v43 = vmax.f32 %v1033_v39, 0.0 }
 0x201   : > { %v1141_v45 = vmax.f32 %v1025_v41, 0.0 }
 0x202   : > { %v1177_v46 = vpack.c.bf16 %v1143_v43, %v1142_v42 }
 0x203   : > { %v1176_v47 = vpack.c.bf16 %v1141_v45, %v1140_v44  ;;  %v2598_v48 = vpop.f32.mrb[28].mxu1 }
 0x204   : > { %v1046_v49 = vadd.f32 %v2598_v48, %v3275_v11  ;;  %v1037_v50 = vpop.f32.mrb[29].mxu1 }
 0x205   : > { %v1038_v51 = vadd.f32 %v3275_v11, %v1037_v50  ;;  %v2599_v52 = vpop.f32.mrb[30].mxu1  ;;  %2656 = vmatprep.mubr.bf16.mxu0 %v1176_v47 }
 0x206   : > { %v1049_v53 = vadd.f32 %v2599_v52, %v3275_v11  ;;  %v1040_v54 = vpop.f32.mrb[31].mxu1  ;;  %2657 = vmatmul.mubr.bf16.gmra.mrb[72].mxu0 %v1177_v46  ;;  %v1146_v56 = vmax.f32 %v1046_v49, 0.0 }
 0x207   : > { %v1041_v55 = vadd.f32 %v3275_v11, %v1040_v54  ;;  %v1144_v58 = vmax.f32 %v1038_v51, 0.0 }
 0x208   : > { %v1147_v57 = vmax.f32 %v1049_v53, 0.0 }
 0x209   : > { %v1145_v59 = vmax.f32 %v1041_v55, 0.0  ;;  %v2875_v55 = vld [vmem:[%s3718_s7 + $0x38] sm:$0xff]  }
 0x20a   : > { %v1179_v60 = vpack.c.bf16 %v1147_v57, %v1146_v56  ;;  %2751 = vmatprep.subr.bf16.mxu1 %v2875_v55  ;;  %2694 = vmatprep.subr.bf16.mxu0 %v2875_v55 }
 0x20b   : > { %v1178_v61 = vpack.c.bf16 %v1145_v59, %v1144_v58  ;;  %v2602_v62 = vpop.f32.mrb[32].mxu1  ;;  %2759 = vmatpush3.bf16.msra.mxu1 %v2875_v55  ;;  %2695 = vmatpush3.bf16.msra.mxu0 %v2875_v55 }
 0x20c   : > { %v1062_v63 = vadd.f32 %v2602_v62, %v3275_v11  ;;  %v1053_v0 = vpop.f32.mrb[33].mxu1 }
 0x20d   : > { %v1054_v1 = vadd.f32 %v3275_v11, %v1053_v0  ;;  %v2603_v2 = vpop.f32.mrb[34].mxu1  ;;  %2660 = vmatprep.mubr.bf16.mxu0 %v1178_v61 }
 0x20e   : > { %v1065_v3 = vadd.f32 %v2603_v2, %v3275_v11  ;;  %v1056_v4 = vpop.f32.mrb[35].mxu1  ;;  %2661 = vmatmul.mubr.bf16.gmra.mrb[76].mxu0 %v1179_v60  ;;  %v1150_v6 = vmax.f32 %v1062_v63, 0.0 }
 0x20f   : > { %v1057_v5 = vadd.f32 %v3275_v11, %v1056_v4  ;;  %v1148_v7 = vmax.f32 %v1054_v1, 0.0 }
 0x210   : > { %v1151_v26 = vmax.f32 %v1065_v3, 0.0 }
 0x211   : > { %v1149_v12 = vmax.f32 %v1057_v5, 0.0 }
 0x212   : > { %v1181_v8 = vpack.c.bf16 %v1151_v26, %v1150_v6 }
 0x213   : > { %v1180_v13 = vpack.c.bf16 %v1149_v12, %v1148_v7  ;;  %v2606_v14 = vpop.f32.mrb[36].mxu1 }
 0x214   : > { %v1078_v15 = vadd.f32 %v2606_v14, %v3275_v11  ;;  %v1069_v16 = vpop.f32.mrb[37].mxu1 }
 0x215   : > { %v1070_v9 = vadd.f32 %v3275_v11, %v1069_v16  ;;  %v2607_v17 = vpop.f32.mrb[38].mxu1  ;;  %2664 = vmatprep.mubr.bf16.mxu0 %v1180_v13 }
 0x216   : > { %v1081_v18 = vadd.f32 %v2607_v17, %v3275_v11  ;;  %v1072_v19 = vpop.f32.mrb[39].mxu1  ;;  %2665 = vmatmul.mubr.bf16.gmra.mrb[80].mxu0 %v1181_v8  ;;  %v1154_v21 = vmax.f32 %v1078_v15, 0.0 }
 0x217   : > { %v1073_v20 = vadd.f32 %v3275_v11, %v1072_v19  ;;  %v1152_v23 = vmax.f32 %v1070_v9, 0.0 }
 0x218   : > { %v1155_v22 = vmax.f32 %v1081_v18, 0.0 }
 0x219   : > { %v1153_v24 = vmax.f32 %v1073_v20, 0.0 }
 0x21a   : > { %v1183_v25 = vpack.c.bf16 %v1155_v22, %v1154_v21 }
 0x21b   : > { %v1182_v27 = vpack.c.bf16 %v1153_v24, %v1152_v23  ;;  %v2610_v10 = vpop.f32.mrb[40].mxu1 }
 0x21c   : > { %v1094_v28 = vadd.f32 %v2610_v10, %v3275_v11  ;;  %v1085_v29 = vpop.f32.mrb[41].mxu1 }
 0x21d   : > { %v1086_v30 = vadd.f32 %v3275_v11, %v1085_v29  ;;  %v2611_v31 = vpop.f32.mrb[42].mxu1  ;;  %2668 = vmatprep.mubr.bf16.mxu0 %v1182_v27 }
 0x21e   : > { %v1097_v32 = vadd.f32 %v2611_v31, %v3275_v11  ;;  %v1088_v33 = vpop.f32.mrb[43].mxu1  ;;  %2669 = vmatmul.mubr.bf16.gmra.mrb[84].mxu0 %v1183_v25  ;;  %v1158_v35 = vmax.f32 %v1094_v28, 0.0 }
 0x21f   : > { %v1089_v34 = vadd.f32 %v3275_v11, %v1088_v33  ;;  %v1156_v37 = vmax.f32 %v1086_v30, 0.0 }
 0x220   : > { %v1159_v36 = vmax.f32 %v1097_v32, 0.0 }
 0x221   : > { %v1157_v38 = vmax.f32 %v1089_v34, 0.0 }
 0x222   : > { %v1185_v39 = vpack.c.bf16 %v1159_v36, %v1158_v35 }
 0x223   : > { %v1184_v40 = vpack.c.bf16 %v1157_v38, %v1156_v37  ;;  %v2614_v41 = vpop.f32.mrb[44].mxu1 }
 0x224   : > { %v1110_v42 = vadd.f32 %v2614_v41, %v3275_v11  ;;  %v1101_v43 = vpop.f32.mrb[45].mxu1 }
 0x225   : > { %v1102_v44 = vadd.f32 %v3275_v11, %v1101_v43  ;;  %v2615_v45 = vpop.f32.mrb[46].mxu1  ;;  %2672 = vmatprep.mubr.bf16.mxu0 %v1184_v40 }
 0x226   : > { %v1113_v46 = vadd.f32 %v2615_v45, %v3275_v11  ;;  %v1104_v47 = vpop.f32.mrb[47].mxu1  ;;  %2673 = vmatmul.mubr.bf16.gmra.mrb[88].mxu0 %v1185_v39  ;;  %v1162_v49 = vmax.f32 %v1110_v42, 0.0 }
 0x227   : > { %v1105_v48 = vadd.f32 %v3275_v11, %v1104_v47  ;;  %v1160_v51 = vmax.f32 %v1102_v44, 0.0  ;;  %v3340_v11 = vld [vmem:[%s3717_s6] ss:$0 sm:$0xff] }
 0x228   : > { %v1163_v50 = vmax.f32 %v1113_v46, 0.0 }
 0x229   : > { %v1161_v52 = vmax.f32 %v1105_v48, 0.0 }
 0x22a   : > { %v1187_v53 = vpack.c.bf16 %v1163_v50, %v1162_v49 }
 0x22b   : > { %v1186_v54 = vpack.c.bf16 %v1161_v52, %v1160_v51 }
 0x22d   : > { %2676 = vmatprep.mubr.bf16.mxu0 %v1186_v54 }
 0x22e   : > { %2677 = vmatmul.mubr.bf16.gmra.mrb[92].mxu0 %v1187_v53 }
 0x2a9   : > { %v2634_v56 = vpop.f32.mrb[48].mxu0 }
 0x2aa   : > { %v1302_v57 = vadd.f32 %v2634_v56, %v3340_v11  ;;  %v1293_v58 = vpop.f32.mrb[49].mxu0 }
 0x2ab   : > { %v1294_v59 = vadd.f32 %v3340_v11, %v1293_v58  ;;  %v2635_v60 = vpop.f32.mrb[50].mxu0 }
 0x2ac   : > { %v1305_v61 = vadd.f32 %v2635_v60, %v3340_v11  ;;  %v1296_v62 = vpop.f32.mrb[51].mxu0  ;;  %v1486_v0 = vmax.f32 %v1302_v57, 0.0 }
 0x2ad   : > { %v1297_v63 = vadd.f32 %v3340_v11, %v1296_v62  ;;  %v1484_v2 = vmax.f32 %v1294_v59, 0.0 }
 0x2ae   : > { %v1487_v1 = vmax.f32 %v1305_v61, 0.0 }
 0x2af   : > { %v1485_v3 = vmax.f32 %v1297_v63, 0.0 }
 0x2b0   : > { %v1533_v4 = vpack.c.bf16 %v1487_v1, %v1486_v0 }
 0x2b1   : > { %v1532_v5 = vpack.c.bf16 %v1485_v3, %v1484_v2  ;;  %v2638_v6 = vpop.f32.mrb[52].mxu0 }
 0x2b2   : > { %v1318_v26 = vadd.f32 %v2638_v6, %v3340_v11  ;;  %v1309_v7 = vpop.f32.mrb[53].mxu0 }
 0x2b3   : > { %v1310_v12 = vadd.f32 %v3340_v11, %v1309_v7  ;;  %v2639_v8 = vpop.f32.mrb[54].mxu0  ;;  %2696 = vmatprep.mubr.bf16.mxu0 %v1532_v5 }
 0x2b4   : > { %v1321_v13 = vadd.f32 %v2639_v8, %v3340_v11  ;;  %v1312_v14 = vpop.f32.mrb[55].mxu0  ;;  %2697 = vmatmul.mubr.bf16.vlgmr.msra.gmra.mrb[96].mxu0 %v1533_v4  ;;  %v1490_v16 = vmax.f32 %v1318_v26, 0.0 }
 0x2b5   : > { %v1313_v15 = vadd.f32 %v3340_v11, %v1312_v14  ;;  %v1488_v17 = vmax.f32 %v1310_v12, 0.0 }
 0x2b6   : > { %v1491_v9 = vmax.f32 %v1321_v13, 0.0 }
 0x2b7   : > { %v1489_v18 = vmax.f32 %v1313_v15, 0.0 }
 0x2b8   : > { %v1535_v19 = vpack.c.bf16 %v1491_v9, %v1490_v16 }
 0x2b9   : > { %v1534_v20 = vpack.c.bf16 %v1489_v18, %v1488_v17  ;;  %v2642_v21 = vpop.f32.mrb[56].mxu0 }
 0x2ba   : > { %v1334_v22 = vadd.f32 %v2642_v21, %v3340_v11  ;;  %v1325_v23 = vpop.f32.mrb[57].mxu0 }
 0x2bb   : > { %v1326_v24 = vadd.f32 %v3340_v11, %v1325_v23  ;;  %v2643_v25 = vpop.f32.mrb[58].mxu0  ;;  %2700 = vmatprep.mubr.bf16.mxu1 %v1534_v20 }
 0x2bc   : > { %v1337_v27 = vadd.f32 %v2643_v25, %v3340_v11  ;;  %v1328_v10 = vpop.f32.mrb[59].mxu0  ;;  %2701 = vmatmul.mubr.bf16.vlgmr.msra.gmra.mrb[48].mxu1 %v1535_v19  ;;  %v1494_v29 = vmax.f32 %v1334_v22, 0.0 }
 0x2bd   : > { %v1329_v28 = vadd.f32 %v3340_v11, %v1328_v10  ;;  %v1492_v31 = vmax.f32 %v1326_v24, 0.0 }
 0x2be   : > { %v1495_v30 = vmax.f32 %v1337_v27, 0.0 }
 0x2bf   : > { %v1493_v32 = vmax.f32 %v1329_v28, 0.0 }
 0x2c0   : > { %v1537_v33 = vpack.c.bf16 %v1495_v30, %v1494_v29 }
 0x2c1   : > { %v1536_v34 = vpack.c.bf16 %v1493_v32, %v1492_v31  ;;  %v2646_v35 = vpop.f32.mrb[60].mxu0 }
 0x2c2   : > { %v1350_v36 = vadd.f32 %v2646_v35, %v3340_v11  ;;  %v1341_v37 = vpop.f32.mrb[61].mxu0 }
 0x2c3   : > { %v1342_v38 = vadd.f32 %v3340_v11, %v1341_v37  ;;  %v2647_v39 = vpop.f32.mrb[62].mxu0  ;;  %2704 = vmatprep.mubr.bf16.mxu1 %v1536_v34 }
 0x2c4   : > { %v1353_v40 = vadd.f32 %v2647_v39, %v3340_v11  ;;  %v1344_v41 = vpop.f32.mrb[63].mxu0  ;;  %2705 = vmatmul.mubr.bf16.gmra.mrb[52].mxu1 %v1537_v33  ;;  %v1498_v43 = vmax.f32 %v1350_v36, 0.0 }
 0x2c5   : > { %v1345_v42 = vadd.f32 %v3340_v11, %v1344_v41  ;;  %v1496_v45 = vmax.f32 %v1342_v38, 0.0 }
 0x2c6   : > { %v1499_v44 = vmax.f32 %v1353_v40, 0.0 }
 0x2c7   : > { %v1497_v46 = vmax.f32 %v1345_v42, 0.0 }
 0x2c8   : > { %v1539_v47 = vpack.c.bf16 %v1499_v44, %v1498_v43 }
 0x2c9   : > { %v1538_v48 = vpack.c.bf16 %v1497_v46, %v1496_v45  ;;  %v2650_v49 = vpop.f32.mrb[64].mxu0 }
 0x2ca   : > { %v1366_v50 = vadd.f32 %v2650_v49, %v3340_v11  ;;  %v1357_v51 = vpop.f32.mrb[65].mxu0 }
 0x2cb   : > { %v1358_v52 = vadd.f32 %v3340_v11, %v1357_v51  ;;  %v2651_v53 = vpop.f32.mrb[66].mxu0  ;;  %2708 = vmatprep.mubr.bf16.mxu1 %v1538_v48 }
 0x2cc   : > { %v1369_v54 = vadd.f32 %v2651_v53, %v3340_v11  ;;  %v1360_v55 = vpop.f32.mrb[67].mxu0  ;;  %2709 = vmatmul.mubr.bf16.gmra.mrb[56].mxu1 %v1539_v47  ;;  %v1502_v57 = vmax.f32 %v1366_v50, 0.0 }
 0x2cd   : > { %v1361_v56 = vadd.f32 %v3340_v11, %v1360_v55  ;;  %v1500_v59 = vmax.f32 %v1358_v52, 0.0 }
 0x2ce   : > { %v1503_v58 = vmax.f32 %v1369_v54, 0.0 }
 0x2cf   : > { %v1501_v60 = vmax.f32 %v1361_v56, 0.0 }
 0x2d0   : > { %v1541_v61 = vpack.c.bf16 %v1503_v58, %v1502_v57 }
 0x2d1   : > { %v1540_v62 = vpack.c.bf16 %v1501_v60, %v1500_v59  ;;  %v2654_v63 = vpop.f32.mrb[68].mxu0 }
 0x2d2   : > { %v1382_v0 = vadd.f32 %v2654_v63, %v3340_v11  ;;  %v1373_v1 = vpop.f32.mrb[69].mxu0 }
 0x2d3   : > { %v1374_v2 = vadd.f32 %v3340_v11, %v1373_v1  ;;  %v2655_v3 = vpop.f32.mrb[70].mxu0  ;;  %2712 = vmatprep.mubr.bf16.mxu1 %v1540_v62 }
 0x2d4   : > { %v1385_v4 = vadd.f32 %v2655_v3, %v3340_v11  ;;  %v1376_v5 = vpop.f32.mrb[71].mxu0  ;;  %2713 = vmatmul.mubr.bf16.gmra.mrb[60].mxu1 %v1541_v61  ;;  %v1506_v26 = vmax.f32 %v1382_v0, 0.0 }
 0x2d5   : > { %v1377_v6 = vadd.f32 %v3340_v11, %v1376_v5  ;;  %v1504_v12 = vmax.f32 %v1374_v2, 0.0 }
 0x2d6   : > { %v1507_v7 = vmax.f32 %v1385_v4, 0.0 }
 0x2d7   : > { %v1505_v8 = vmax.f32 %v1377_v6, 0.0 }
 0x2d8   : > { %v1543_v13 = vpack.c.bf16 %v1507_v7, %v1506_v26 }
 0x2d9   : > { %v1542_v14 = vpack.c.bf16 %v1505_v8, %v1504_v12  ;;  %v2658_v15 = vpop.f32.mrb[72].mxu0 }
 0x2da   : > { %v1398_v16 = vadd.f32 %v2658_v15, %v3340_v11  ;;  %v1389_v9 = vpop.f32.mrb[73].mxu0 }
 0x2db   : > { %v1390_v17 = vadd.f32 %v3340_v11, %v1389_v9  ;;  %v2659_v18 = vpop.f32.mrb[74].mxu0  ;;  %2716 = vmatprep.mubr.bf16.mxu1 %v1542_v14 }
 0x2dc   : > { %v1401_v19 = vadd.f32 %v2659_v18, %v3340_v11  ;;  %v1392_v20 = vpop.f32.mrb[75].mxu0  ;;  %2717 = vmatmul.mubr.bf16.gmra.mrb[64].mxu1 %v1543_v13  ;;  %v1510_v22 = vmax.f32 %v1398_v16, 0.0 }
 0x2dd   : > { %v1393_v21 = vadd.f32 %v3340_v11, %v1392_v20  ;;  %v1508_v24 = vmax.f32 %v1390_v17, 0.0 }
 0x2de   : > { %v1511_v23 = vmax.f32 %v1401_v19, 0.0 }
 0x2df   : > { %v1509_v25 = vmax.f32 %v1393_v21, 0.0 }
 0x2e0   : > { %v1545_v27 = vpack.c.bf16 %v1511_v23, %v1510_v22 }
 0x2e1   : > { %v1544_v10 = vpack.c.bf16 %v1509_v25, %v1508_v24  ;;  %v2662_v28 = vpop.f32.mrb[76].mxu0 }
 0x2e2   : > { %v1414_v29 = vadd.f32 %v2662_v28, %v3340_v11  ;;  %v1405_v30 = vpop.f32.mrb[77].mxu0 }
 0x2e3   : > { %v1406_v31 = vadd.f32 %v3340_v11, %v1405_v30  ;;  %v2663_v32 = vpop.f32.mrb[78].mxu0  ;;  %2720 = vmatprep.mubr.bf16.mxu1 %v1544_v10 }
 0x2e4   : > { %v1417_v33 = vadd.f32 %v2663_v32, %v3340_v11  ;;  %v1408_v34 = vpop.f32.mrb[79].mxu0  ;;  %2721 = vmatmul.mubr.bf16.gmra.mrb[68].mxu1 %v1545_v27  ;;  %v1514_v36 = vmax.f32 %v1414_v29, 0.0 }
 0x2e5   : > { %v1409_v35 = vadd.f32 %v3340_v11, %v1408_v34  ;;  %v1512_v38 = vmax.f32 %v1406_v31, 0.0 }
 0x2e6   : > { %v1515_v37 = vmax.f32 %v1417_v33, 0.0 }
 0x2e7   : > { %v1513_v39 = vmax.f32 %v1409_v35, 0.0  ;;  %v3394_v35 = vld [vmem:[%s3719_s8] ss:$0 sm:$0xff] }
 0x2e8   : > { %v1547_v40 = vpack.c.bf16 %v1515_v37, %v1514_v36 }
 0x2e9   : > { %v1546_v41 = vpack.c.bf16 %v1513_v39, %v1512_v38  ;;  %v2666_v42 = vpop.f32.mrb[80].mxu0 }
 0x2ea   : > { %v1430_v43 = vadd.f32 %v2666_v42, %v3340_v11  ;;  %v1421_v44 = vpop.f32.mrb[81].mxu0 }
 0x2eb   : > { %v1422_v45 = vadd.f32 %v3340_v11, %v1421_v44  ;;  %v2667_v46 = vpop.f32.mrb[82].mxu0  ;;  %2724 = vmatprep.mubr.bf16.mxu1 %v1546_v41 }
 0x2ec   : > { %v1433_v47 = vadd.f32 %v2667_v46, %v3340_v11  ;;  %v1424_v48 = vpop.f32.mrb[83].mxu0  ;;  %2725 = vmatmul.mubr.bf16.gmra.mrb[72].mxu1 %v1547_v40  ;;  %v1518_v50 = vmax.f32 %v1430_v43, 0.0 }
 0x2ed   : > { %v1425_v49 = vadd.f32 %v3340_v11, %v1424_v48  ;;  %v1516_v52 = vmax.f32 %v1422_v45, 0.0 }
 0x2ee   : > { %v1519_v51 = vmax.f32 %v1433_v47, 0.0 }
 0x2ef   : > { %v1517_v53 = vmax.f32 %v1425_v49, 0.0 }
 0x2f0   : > { %v1549_v54 = vpack.c.bf16 %v1519_v51, %v1518_v50 }
 0x2f1   : > { %v1548_v55 = vpack.c.bf16 %v1517_v53, %v1516_v52  ;;  %v2670_v56 = vpop.f32.mrb[84].mxu0 }
 0x2f2   : > { %v1446_v57 = vadd.f32 %v2670_v56, %v3340_v11  ;;  %v1437_v58 = vpop.f32.mrb[85].mxu0 }
 0x2f3   : > { %v1438_v59 = vadd.f32 %v3340_v11, %v1437_v58  ;;  %v2671_v60 = vpop.f32.mrb[86].mxu0  ;;  %2728 = vmatprep.mubr.bf16.mxu1 %v1548_v55 }
 0x2f4   : > { %v1449_v61 = vadd.f32 %v2671_v60, %v3340_v11  ;;  %v1440_v62 = vpop.f32.mrb[87].mxu0  ;;  %2729 = vmatmul.mubr.bf16.gmra.mrb[76].mxu1 %v1549_v54  ;;  %v1522_v0 = vmax.f32 %v1446_v57, 0.0 }
 0x2f5   : > { %v1441_v63 = vadd.f32 %v3340_v11, %v1440_v62  ;;  %v1520_v2 = vmax.f32 %v1438_v59, 0.0 }
 0x2f6   : > { %v1523_v1 = vmax.f32 %v1449_v61, 0.0 }
 0x2f7   : > { %v1521_v3 = vmax.f32 %v1441_v63, 0.0 }
 0x2f8   : > { %v1551_v4 = vpack.c.bf16 %v1523_v1, %v1522_v0 }
 0x2f9   : > { %v1550_v5 = vpack.c.bf16 %v1521_v3, %v1520_v2  ;;  %v2674_v6 = vpop.f32.mrb[88].mxu0 }
 0x2fa   : > { %v1462_v26 = vadd.f32 %v2674_v6, %v3340_v11  ;;  %v1453_v7 = vpop.f32.mrb[89].mxu0 }
 0x2fb   : > { %v1454_v12 = vadd.f32 %v3340_v11, %v1453_v7  ;;  %v2675_v8 = vpop.f32.mrb[90].mxu0  ;;  %2732 = vmatprep.mubr.bf16.mxu1 %v1550_v5 }
 0x2fc   : > { %v1465_v13 = vadd.f32 %v2675_v8, %v3340_v11  ;;  %v1456_v14 = vpop.f32.mrb[91].mxu0  ;;  %2733 = vmatmul.mubr.bf16.gmra.mrb[80].mxu1 %v1551_v4  ;;  %v1526_v16 = vmax.f32 %v1462_v26, 0.0 }
 0x2fd   : > { %v1457_v15 = vadd.f32 %v3340_v11, %v1456_v14  ;;  %v1524_v17 = vmax.f32 %v1454_v12, 0.0 }
 0x2fe   : > { %v1527_v9 = vmax.f32 %v1465_v13, 0.0 }
 0x2ff   : > { %v1525_v18 = vmax.f32 %v1457_v15, 0.0 }
 0x300   : > { %v1553_v19 = vpack.c.bf16 %v1527_v9, %v1526_v16 }
 0x301   : > { %v1552_v20 = vpack.c.bf16 %v1525_v18, %v1524_v17  ;;  %v2678_v21 = vpop.f32.mrb[92].mxu0 }
 0x302   : > { %v1478_v22 = vadd.f32 %v2678_v21, %v3340_v11  ;;  %v1469_v23 = vpop.f32.mrb[93].mxu0 }
 0x303   : > { %v1470_v24 = vadd.f32 %v3340_v11, %v1469_v23  ;;  %v2679_v25 = vpop.f32.mrb[94].mxu0  ;;  %2736 = vmatprep.mubr.bf16.mxu1 %v1552_v20 }
 0x304   : > { %v1481_v27 = vadd.f32 %v2679_v25, %v3340_v11  ;;  %v1472_v10 = vpop.f32.mrb[95].mxu0  ;;  %2737 = vmatmul.mubr.bf16.gmra.mrb[84].mxu1 %v1553_v19  ;;  %v1530_v29 = vmax.f32 %v1478_v22, 0.0 }
 0x305   : > { %v1473_v28 = vadd.f32 %v3340_v11, %v1472_v10  ;;  %v1528_v31 = vmax.f32 %v1470_v24, 0.0 }
 0x306   : > { %v1531_v30 = vmax.f32 %v1481_v27, 0.0 }
 0x307   : > { %v1529_v32 = vmax.f32 %v1473_v28, 0.0 }
 0x308   : > { %v1555_v33 = vpack.c.bf16 %v1531_v30, %v1530_v29 }
 0x309   : > { %v1554_v34 = vpack.c.bf16 %v1529_v32, %v1528_v31 }
 0x30b   : > { %2740 = vmatprep.mubr.bf16.mxu1 %v1554_v34 }
 0x30c   : > { %2741 = vmatmul.mubr.bf16.gmra.mrb[88].mxu1 %v1555_v33 }
 0x387   : > { %v2698_v36 = vpop.f32.mrb[96].mxu0 }
 0x388   : > { %v1670_v37 = vadd.f32 %v2698_v36, %v3394_v35  ;;  %v1661_v11 = vpop.f32.mrb[97].mxu0 }
 0x389   : > { %v1662_v38 = vadd.f32 %v3394_v35, %v1661_v11  ;;  %v2699_v39 = vpop.f32.mrb[98].mxu0 }
 0x38a   : > { %1855 = vst.msk [vmem:[%s3398_s11 + $0x10] sm:$0xff] %vm1852_vm1, %v1670_v37  ;;  %v1673_v40 = vadd.f32 %v2699_v39, %v3394_v35  ;;  %v1664_v41 = vpop.f32.mrb[99].mxu0 }
 0x38b   : > { %1853 = vst.msk [vmem:[%s3398_s11] sm:$0xff] %vm1852_vm1, %v1662_v38  ;;  %v1665_v42 = vadd.f32 %v3394_v35, %v1664_v41 }
 0x38c   : > { %1856 = vst.msk [vmem:[%s3398_s11 + $0x18] sm:$0xff] %vm1852_vm1, %v1673_v40 }
 0x38d   : > { %1854 = vst.msk [vmem:[%s3398_s11 + $0x8] sm:$0xff] %vm1852_vm1, %v1665_v42 }
 0x38f   : > { %v2702_v43 = vpop.f32.mrb[48].mxu1 }
 0x390   : > { %v1686_v44 = vadd.f32 %v2702_v43, %v3394_v35  ;;  %v1677_v45 = vpop.f32.mrb[49].mxu1 }
 0x391   : > { %v1678_v46 = vadd.f32 %v3394_v35, %v1677_v45  ;;  %v2703_v47 = vpop.f32.mrb[50].mxu1 }
 0x392   : > { %1859 = vst.msk [vmem:[%s3398_s11 + $0x30] sm:$0xff] %vm1852_vm1, %v1686_v44  ;;  %v1689_v48 = vadd.f32 %v2703_v47, %v3394_v35  ;;  %v1680_v49 = vpop.f32.mrb[51].mxu1 }
 0x393   : > { %1857 = vst.msk [vmem:[%s3398_s11 + $0x20] sm:$0xff] %vm1852_vm1, %v1678_v46  ;;  %v1681_v50 = vadd.f32 %v3394_v35, %v1680_v49 }
 0x394   : > { %1860 = vst.msk [vmem:[%s3398_s11 + $0x38] sm:$0xff] %vm1852_vm1, %v1689_v48 }
 0x395   : > { %1858 = vst.msk [vmem:[%s3398_s11 + $0x28] sm:$0xff] %vm1852_vm1, %v1681_v50 }
 0x397   : > { %v2706_v51 = vpop.f32.mrb[52].mxu1 }
 0x398   : > { %v1702_v52 = vadd.f32 %v2706_v51, %v3394_v35  ;;  %v1693_v53 = vpop.f32.mrb[53].mxu1 }
 0x399   : > { %v1694_v54 = vadd.f32 %v3394_v35, %v1693_v53  ;;  %v2707_v55 = vpop.f32.mrb[54].mxu1 }
 0x39a   : > { %1863 = vst.msk [vmem:[%s3398_s11 + $0x50] sm:$0xff] %vm1852_vm1, %v1702_v52  ;;  %v1705_v56 = vadd.f32 %v2707_v55, %v3394_v35  ;;  %v1696_v57 = vpop.f32.mrb[55].mxu1 }
 0x39b   : > { %1861 = vst.msk [vmem:[%s3398_s11 + $0x40] sm:$0xff] %vm1852_vm1, %v1694_v54  ;;  %v1697_v58 = vadd.f32 %v3394_v35, %v1696_v57 }
 0x39c   : > { %1864 = vst.msk [vmem:[%s3398_s11 + $0x58] sm:$0xff] %vm1852_vm1, %v1705_v56 }
 0x39d   : > { %1862 = vst.msk [vmem:[%s3398_s11 + $0x48] sm:$0xff] %vm1852_vm1, %v1697_v58 }
 0x39f   : > { %v2710_v59 = vpop.f32.mrb[56].mxu1 }
 0x3a0   : > { %v1718_v60 = vadd.f32 %v2710_v59, %v3394_v35  ;;  %v1709_v61 = vpop.f32.mrb[57].mxu1 }
 0x3a1   : > { %v1710_v62 = vadd.f32 %v3394_v35, %v1709_v61  ;;  %v2711_v63 = vpop.f32.mrb[58].mxu1 }
 0x3a2   : > { %1867 = vst.msk [vmem:[%s3398_s11 + $0x70] sm:$0xff] %vm1852_vm1, %v1718_v60  ;;  %v1721_v0 = vadd.f32 %v2711_v63, %v3394_v35  ;;  %v1712_v1 = vpop.f32.mrb[59].mxu1 }
 0x3a3   : > { %1865 = vst.msk [vmem:[%s3398_s11 + $0x60] sm:$0xff] %vm1852_vm1, %v1710_v62  ;;  %v1713_v2 = vadd.f32 %v3394_v35, %v1712_v1 }
 0x3a4   : > { %1868 = vst.msk [vmem:[%s3398_s11 + $0x78] sm:$0xff] %vm1852_vm1, %v1721_v0 }
 0x3a5   : > { %1866 = vst.msk [vmem:[%s3398_s11 + $0x68] sm:$0xff] %vm1852_vm1, %v1713_v2 }
 0x3a7   : > { %v2714_v3 = vpop.f32.mrb[60].mxu1 }
 0x3a8   : > { %v1734_v4 = vadd.f32 %v2714_v3, %v3394_v35  ;;  %v1725_v5 = vpop.f32.mrb[61].mxu1 }
 0x3a9   : > { %v1726_v6 = vadd.f32 %v3394_v35, %v1725_v5  ;;  %v2715_v26 = vpop.f32.mrb[62].mxu1 }
 0x3aa   : > { %1871 = vst.msk [vmem:[%s3398_s11 + $0x90] sm:$0xff] %vm1852_vm1, %v1734_v4  ;;  %v1737_v7 = vadd.f32 %v2715_v26, %v3394_v35  ;;  %v1728_v12 = vpop.f32.mrb[63].mxu1 }
 0x3ab   : > { %1869 = vst.msk [vmem:[%s3398_s11 + $0x80] sm:$0xff] %vm1852_vm1, %v1726_v6  ;;  %v1729_v8 = vadd.f32 %v3394_v35, %v1728_v12 }
 0x3ac   : > { %1872 = vst.msk [vmem:[%s3398_s11 + $0x98] sm:$0xff] %vm1852_vm1, %v1737_v7 }
 0x3ad   : > { %1870 = vst.msk [vmem:[%s3398_s11 + $0x88] sm:$0xff] %vm1852_vm1, %v1729_v8 }
 0x3af   : > { %v2718_v13 = vpop.f32.mrb[64].mxu1 }
 0x3b0   : > { %v1750_v14 = vadd.f32 %v2718_v13, %v3394_v35  ;;  %v1741_v15 = vpop.f32.mrb[65].mxu1 }
 0x3b1   : > { %v1742_v16 = vadd.f32 %v3394_v35, %v1741_v15  ;;  %v2719_v9 = vpop.f32.mrb[66].mxu1 }
 0x3b2   : > { %1875 = vst.msk [vmem:[%s3398_s11 + $0xb0] sm:$0xff] %vm1852_vm1, %v1750_v14  ;;  %v1753_v17 = vadd.f32 %v2719_v9, %v3394_v35  ;;  %v1744_v18 = vpop.f32.mrb[67].mxu1 }
 0x3b3   : > { %1873 = vst.msk [vmem:[%s3398_s11 + $0xa0] sm:$0xff] %vm1852_vm1, %v1742_v16  ;;  %v1745_v19 = vadd.f32 %v3394_v35, %v1744_v18 }
 0x3b4   : > { %1876 = vst.msk [vmem:[%s3398_s11 + $0xb8] sm:$0xff] %vm1852_vm1, %v1753_v17 }
 0x3b5   : > { %1874 = vst.msk [vmem:[%s3398_s11 + $0xa8] sm:$0xff] %vm1852_vm1, %v1745_v19 }
 0x3b7   : > { %v2722_v20 = vpop.f32.mrb[68].mxu1 }
 0x3b8   : > { %v1766_v21 = vadd.f32 %v2722_v20, %v3394_v35  ;;  %v1757_v22 = vpop.f32.mrb[69].mxu1 }
 0x3b9   : > { %v1758_v23 = vadd.f32 %v3394_v35, %v1757_v22  ;;  %v2723_v24 = vpop.f32.mrb[70].mxu1 }
 0x3ba   : > { %1879 = vst.msk [vmem:[%s3398_s11 + $0xd0] sm:$0xff] %vm1852_vm1, %v1766_v21  ;;  %v1769_v25 = vadd.f32 %v2723_v24, %v3394_v35  ;;  %v1760_v27 = vpop.f32.mrb[71].mxu1 }
 0x3bb   : > { %1877 = vst.msk [vmem:[%s3398_s11 + $0xc0] sm:$0xff] %vm1852_vm1, %v1758_v23  ;;  %v1761_v10 = vadd.f32 %v3394_v35, %v1760_v27 }
 0x3bc   : > { %1880 = vst.msk [vmem:[%s3398_s11 + $0xd8] sm:$0xff] %vm1852_vm1, %v1769_v25 }
 0x3bd   : > { %1878 = vst.msk [vmem:[%s3398_s11 + $0xc8] sm:$0xff] %vm1852_vm1, %v1761_v10 }
 0x3bf   : > { %v2726_v28 = vpop.f32.mrb[72].mxu1 }
 0x3c0   : > { %v1782_v29 = vadd.f32 %v2726_v28, %v3394_v35  ;;  %v1773_v30 = vpop.f32.mrb[73].mxu1 }
 0x3c1   : > { %v1774_v31 = vadd.f32 %v3394_v35, %v1773_v30  ;;  %v2727_v32 = vpop.f32.mrb[74].mxu1 }
 0x3c2   : > { %1883 = vst.msk [vmem:[%s3398_s11 + $0xf0] sm:$0xff] %vm1852_vm1, %v1782_v29  ;;  %v1785_v33 = vadd.f32 %v2727_v32, %v3394_v35  ;;  %v1776_v34 = vpop.f32.mrb[75].mxu1 }
 0x3c3   : > { %1881 = vst.msk [vmem:[%s3398_s11 + $0xe0] sm:$0xff] %vm1852_vm1, %v1774_v31  ;;  %v1777_v36 = vadd.f32 %v3394_v35, %v1776_v34 }
 0x3c4   : > { %1884 = vst.msk [vmem:[%s3398_s11 + $0xf8] sm:$0xff] %vm1852_vm1, %v1785_v33 }
 0x3c5   : > { %1882 = vst.msk [vmem:[%s3398_s11 + $0xe8] sm:$0xff] %vm1852_vm1, %v1777_v36 }
 0x3c7   : > { %v2730_v37 = vpop.f32.mrb[76].mxu1 }
 0x3c8   : > { %v1798_v11 = vadd.f32 %v2730_v37, %v3394_v35  ;;  %v1789_v38 = vpop.f32.mrb[77].mxu1 }
 0x3c9   : > { %v1790_v39 = vadd.f32 %v3394_v35, %v1789_v38  ;;  %v2731_v40 = vpop.f32.mrb[78].mxu1 }
 0x3ca   : > { %1887 = vst.msk [vmem:[%s3398_s11 + $0x110] sm:$0xff] %vm1852_vm1, %v1798_v11  ;;  %v1801_v41 = vadd.f32 %v2731_v40, %v3394_v35  ;;  %v1792_v42 = vpop.f32.mrb[79].mxu1 }
 0x3cb   : > { %1885 = vst.msk [vmem:[%s3398_s11 + $0x100] sm:$0xff] %vm1852_vm1, %v1790_v39  ;;  %v1793_v43 = vadd.f32 %v3394_v35, %v1792_v42 }
 0x3cc   : > { %1888 = vst.msk [vmem:[%s3398_s11 + $0x118] sm:$0xff] %vm1852_vm1, %v1801_v41 }
 0x3cd   : > { %1886 = vst.msk [vmem:[%s3398_s11 + $0x108] sm:$0xff] %vm1852_vm1, %v1793_v43 }
 0x3cf   : > { %v2734_v44 = vpop.f32.mrb[80].mxu1 }
 0x3d0   : > { %v1814_v45 = vadd.f32 %v2734_v44, %v3394_v35  ;;  %v1805_v46 = vpop.f32.mrb[81].mxu1 }
 0x3d1   : > { %v1806_v47 = vadd.f32 %v3394_v35, %v1805_v46  ;;  %v2735_v48 = vpop.f32.mrb[82].mxu1 }
 0x3d2   : > { %1891 = vst.msk [vmem:[%s3398_s11 + $0x130] sm:$0xff] %vm1852_vm1, %v1814_v45  ;;  %v1817_v49 = vadd.f32 %v2735_v48, %v3394_v35  ;;  %v1808_v50 = vpop.f32.mrb[83].mxu1 }
 0x3d3   : > { %1889 = vst.msk [vmem:[%s3398_s11 + $0x120] sm:$0xff] %vm1852_vm1, %v1806_v47  ;;  %v1809_v51 = vadd.f32 %v3394_v35, %v1808_v50 }
 0x3d4   : > { %1892 = vst.msk [vmem:[%s3398_s11 + $0x138] sm:$0xff] %vm1852_vm1, %v1817_v49 }
 0x3d5   : > { %1890 = vst.msk [vmem:[%s3398_s11 + $0x128] sm:$0xff] %vm1852_vm1, %v1809_v51 }
 0x3d7   : > { %v2738_v52 = vpop.f32.mrb[84].mxu1 }
 0x3d8   : > { %v1830_v53 = vadd.f32 %v2738_v52, %v3394_v35  ;;  %v1821_v54 = vpop.f32.mrb[85].mxu1 }
 0x3d9   : > { %v1822_v55 = vadd.f32 %v3394_v35, %v1821_v54  ;;  %v2739_v56 = vpop.f32.mrb[86].mxu1 }
 0x3da   : > { %1895 = vst.msk [vmem:[%s3398_s11 + $0x150] sm:$0xff] %vm1852_vm1, %v1830_v53  ;;  %v1833_v57 = vadd.f32 %v2739_v56, %v3394_v35  ;;  %v1824_v58 = vpop.f32.mrb[87].mxu1 }
 0x3db   : > { %1893 = vst.msk [vmem:[%s3398_s11 + $0x140] sm:$0xff] %vm1852_vm1, %v1822_v55  ;;  %v1825_v59 = vadd.f32 %v3394_v35, %v1824_v58 }
 0x3dc   : > { %1896 = vst.msk [vmem:[%s3398_s11 + $0x158] sm:$0xff] %vm1852_vm1, %v1833_v57 }
 0x3dd   : > { %1894 = vst.msk [vmem:[%s3398_s11 + $0x148] sm:$0xff] %vm1852_vm1, %v1825_v59 }
 0x3df   : > { %v2742_v60 = vpop.f32.mrb[88].mxu1  ;;  %1907 = sbr.rel (!%p3043_p4) target bundleno = 1074 (0x432), region = 60 }
 0x3e0   : > { %v1846_v61 = vadd.f32 %v2742_v60, %v3394_v35  ;;  %v1837_v62 = vpop.f32.mrb[89].mxu1 }
 0x3e1   : > { %v1838_v63 = vadd.f32 %v3394_v35, %v1837_v62  ;;  %v2743_v0 = vpop.f32.mrb[90].mxu1 }
 0x3e2   : > { %1899 = vst.msk [vmem:[%s3398_s11 + $0x170] sm:$0xff] %vm1852_vm1, %v1846_v61  ;;  %v1849_v1 = vadd.f32 %v2743_v0, %v3394_v35  ;;  %v1840_v2 = vpop.f32.mrb[91].mxu1 }
 0x3e3   : > { %1897 = vst.msk [vmem:[%s3398_s11 + $0x160] sm:$0xff] %vm1852_vm1, %v1838_v63  ;;  %v1841_v3 = vadd.f32 %v3394_v35, %v1840_v2 }
 0x3e4   : > { %1900 = vst.msk [vmem:[%s3398_s11 + $0x178] sm:$0xff] %vm1852_vm1, %v1849_v1 }
 0x3e5   : > { %1898 = vst.msk [vmem:[%s3398_s11 + $0x168] sm:$0xff] %vm1852_vm1, %v1841_v3 }
 0x3e6   : > { %s3731_s30 = smov (!%p1910_p8, %s1909_s30), 48 }
 0x3e7   : > { %s2365_s21 = sshll.u32 %s3731_s30, 7 }
 0x3e8   : > { %p2368_p9 = scmp.eq.s32.totalorder %s2365_s21, 0 }
 0x3e9   : > { %2876 = sdivrem.u32 (!%p2368_p9), %s3731_s30, 48 }
 0x3ea   : > { %1918 = sbr.rel (%p2368_p9) target bundleno = 1074 (0x432), region = 64 }
 0x3f2   : > { %s3555_s17 = spop.drf %2876 }
 0x3f3   : > { %p2369_p10 = scmp.le.s32.totalorder %s3555_s17, 0 }
 0x3f4   : > { %s3722_s12 = smov (!%p2369_p10), %s3549_s19  ;;  %s3723_s20 = smov (!%p2369_p10), %s3398_s11 }
 0x3f5   : > { %2262 = sbr.rel (%p2369_p10) target bundleno = 1045 (0x415), region = 140  ;;  %s3564_s22 = smov (!%p2369_p10), 0  }
 0x3f6   : > { %s3566_s23 = smov (!%p2369_p10), 0  }
 0x3fc LB: >> { %v2076_v35 = vld [vmem:[%s2942_s20] sm:$0xff]  ;;  %v2078_v4 = vld [vmem:[%s2942_s20 + $0x8] sm:$0xff]  ;;  %v2080_v5 = vld [vmem:[%s2942_s20 + $0x10] sm:$0xff]  ;;  %s2172_s24 = sadd.s32 1, %s2946_s22  ;;  %s2070_s23 = sadd.s32 1, %s2950_s23   ;;  %s2950_s23 = sphi %s3566_s23, %s2070_s23   ;;  %s2946_s22 = sphi %s3564_s22, %s3726_s22   ;;  %s2942_s20 = sphi %s3723_s20, %s3725_s20   ;;  %s2938_s12 = sphi %s3722_s12, %s3724_s12  }
 0x3fd   : >> { %2077 = vst [vmem:[%s2938_s12] sm:$0xff] %v2076_v35  ;;  %2079 = vst [vmem:[%s2938_s12 + $0x8] sm:$0xff] %v2078_v4  ;;  %v2082_v6 = vld [vmem:[%s2942_s20 + $0x18] sm:$0xff]  ;;  %v2084_v26 = vld [vmem:[%s2942_s20 + $0x20] sm:$0xff]  ;;  %p2173_p11 = scmp.ge.s32.totalorder %s2172_s24, %s3555_s17  ;;  %p2069_p12 = scmp.ge.s32.totalorder %s2070_s23, %s3555_s17 }
 0x3fe   : >> { %2081 = vst [vmem:[%s2938_s12 + $0x10] sm:$0xff] %v2080_v5  ;;  %v2086_v7 = vld [vmem:[%s2942_s20 + $0x28] sm:$0xff]  ;;  %2083 = vst [vmem:[%s2938_s12 + $0x18] sm:$0xff] %v2082_v6  ;;  %v2088_v12 = vld [vmem:[%s2942_s20 + $0x30] sm:$0xff] }
 0x3ff   : >> { %2085 = vst [vmem:[%s2938_s12 + $0x20] sm:$0xff] %v2084_v26  ;;  %2087 = vst [vmem:[%s2938_s12 + $0x28] sm:$0xff] %v2086_v7  ;;  %v2090_v8 = vld [vmem:[%s2942_s20 + $0x38] sm:$0xff]  ;;  %v2092_v13 = vld [vmem:[%s2942_s20 + $0x40] sm:$0xff]  ;;  %s3733_s24 = smov (%p2173_p11, %s2172_s24), 0 }
 0x400   : >> { %2089 = vst [vmem:[%s2938_s12 + $0x30] sm:$0xff] %v2088_v12  ;;  %2091 = vst [vmem:[%s2938_s12 + $0x38] sm:$0xff] %v2090_v8  ;;  %v2094_v14 = vld [vmem:[%s2942_s20 + $0x48] sm:$0xff]  ;;  %v2096_v15 = vld [vmem:[%s2942_s20 + $0x50] sm:$0xff]  ;;  %s2175_s25 = smul.u32 384, %s3733_s24  ;;  %s3726_s22 = smov %s3733_s24 }
 0x401   : >> { %2093 = vst [vmem:[%s2938_s12 + $0x40] sm:$0xff] %v2092_v13  ;;  %v2098_v16 = vld [vmem:[%s2942_s20 + $0x58] sm:$0xff]  ;;  %2095 = vst [vmem:[%s2938_s12 + $0x48] sm:$0xff] %v2094_v14  ;;  %v2100_v9 = vld [vmem:[%s2942_s20 + $0x60] sm:$0xff] }
 0x402   : >> { %2097 = vst [vmem:[%s2938_s12 + $0x50] sm:$0xff] %v2096_v15  ;;  %2099 = vst [vmem:[%s2938_s12 + $0x58] sm:$0xff] %v2098_v16  ;;  %v2102_v17 = vld [vmem:[%s2942_s20 + $0x68] sm:$0xff]  ;;  %v2104_v18 = vld [vmem:[%s2942_s20 + $0x70] sm:$0xff]  ;;  %s3628_s26 = scalar_lea.vmem %s3398_s11, %s2175_s25 [#allocation2]   ;;  %s3631_s27 = scalar_lea.vmem %s3549_s19, %s2175_s25  }
 0x403   : >> { %2101 = vst [vmem:[%s2938_s12 + $0x60] sm:$0xff] %v2100_v9  ;;  %2103 = vst [vmem:[%s2938_s12 + $0x68] sm:$0xff] %v2102_v17  ;;  %v2106_v19 = vld [vmem:[%s2942_s20 + $0x78] sm:$0xff]  ;;  %v2108_v20 = vld [vmem:[%s2942_s20 + $0x80] sm:$0xff] }
 0x404   : >> { %2105 = vst [vmem:[%s2938_s12 + $0x70] sm:$0xff] %v2104_v18  ;;  %v2110_v21 = vld [vmem:[%s2942_s20 + $0x88] sm:$0xff]  ;;  %2107 = vst [vmem:[%s2938_s12 + $0x78] sm:$0xff] %v2106_v19  ;;  %v2112_v22 = vld [vmem:[%s2942_s20 + $0x90] sm:$0xff] }
 0x405   : >> { %2109 = vst [vmem:[%s2938_s12 + $0x80] sm:$0xff] %v2108_v20  ;;  %2111 = vst [vmem:[%s2938_s12 + $0x88] sm:$0xff] %v2110_v21  ;;  %v2114_v23 = vld [vmem:[%s2942_s20 + $0x98] sm:$0xff]  ;;  %v2116_v24 = vld [vmem:[%s2942_s20 + $0xa0] sm:$0xff] }
 0x406   : >> { %2113 = vst [vmem:[%s2938_s12 + $0x90] sm:$0xff] %v2112_v22  ;;  %2115 = vst [vmem:[%s2938_s12 + $0x98] sm:$0xff] %v2114_v23  ;;  %v2118_v25 = vld [vmem:[%s2942_s20 + $0xa8] sm:$0xff]  ;;  %v2120_v27 = vld [vmem:[%s2942_s20 + $0xb0] sm:$0xff] }
 0x407   : >> { %2117 = vst [vmem:[%s2938_s12 + $0xa0] sm:$0xff] %v2116_v24  ;;  %v2122_v10 = vld [vmem:[%s2942_s20 + $0xb8] sm:$0xff]  ;;  %2119 = vst [vmem:[%s2938_s12 + $0xa8] sm:$0xff] %v2118_v25  ;;  %v2124_v28 = vld [vmem:[%s2942_s20 + $0xc0] sm:$0xff] }
 0x408   : >> { %2121 = vst [vmem:[%s2938_s12 + $0xb0] sm:$0xff] %v2120_v27  ;;  %2123 = vst [vmem:[%s2938_s12 + $0xb8] sm:$0xff] %v2122_v10  ;;  %v2126_v29 = vld [vmem:[%s2942_s20 + $0xc8] sm:$0xff]  ;;  %v2128_v30 = vld [vmem:[%s2942_s20 + $0xd0] sm:$0xff] }
 0x409   : >> { %2125 = vst [vmem:[%s2938_s12 + $0xc0] sm:$0xff] %v2124_v28  ;;  %2127 = vst [vmem:[%s2938_s12 + $0xc8] sm:$0xff] %v2126_v29  ;;  %v2130_v31 = vld [vmem:[%s2942_s20 + $0xd8] sm:$0xff]  ;;  %v2132_v32 = vld [vmem:[%s2942_s20 + $0xe0] sm:$0xff] }
 0x40a   : >> { %2129 = vst [vmem:[%s2938_s12 + $0xd0] sm:$0xff] %v2128_v30  ;;  %v2134_v33 = vld [vmem:[%s2942_s20 + $0xe8] sm:$0xff]  ;;  %2131 = vst [vmem:[%s2938_s12 + $0xd8] sm:$0xff] %v2130_v31  ;;  %v2136_v34 = vld [vmem:[%s2942_s20 + $0xf0] sm:$0xff] }
 0x40b   : >> { %2133 = vst [vmem:[%s2938_s12 + $0xe0] sm:$0xff] %v2132_v32  ;;  %2135 = vst [vmem:[%s2938_s12 + $0xe8] sm:$0xff] %v2134_v33  ;;  %v2138_v36 = vld [vmem:[%s2942_s20 + $0xf8] sm:$0xff]  ;;  %v2140_v37 = vld [vmem:[%s2942_s20 + $0x100] sm:$0xff] }
 0x40c   : >> { %2137 = vst [vmem:[%s2938_s12 + $0xf0] sm:$0xff] %v2136_v34  ;;  %2139 = vst [vmem:[%s2938_s12 + $0xf8] sm:$0xff] %v2138_v36  ;;  %v2142_v11 = vld [vmem:[%s2942_s20 + $0x108] sm:$0xff]  ;;  %v2144_v38 = vld [vmem:[%s2942_s20 + $0x110] sm:$0xff] }
 0x40d   : >> { %2141 = vst [vmem:[%s2938_s12 + $0x100] sm:$0xff] %v2140_v37  ;;  %v2146_v39 = vld [vmem:[%s2942_s20 + $0x118] sm:$0xff]  ;;  %2143 = vst [vmem:[%s2938_s12 + $0x108] sm:$0xff] %v2142_v11  ;;  %v2148_v40 = vld [vmem:[%s2942_s20 + $0x120] sm:$0xff] }
 0x40e   : >> { %2145 = vst [vmem:[%s2938_s12 + $0x110] sm:$0xff] %v2144_v38  ;;  %2147 = vst [vmem:[%s2938_s12 + $0x118] sm:$0xff] %v2146_v39  ;;  %v2150_v41 = vld [vmem:[%s2942_s20 + $0x128] sm:$0xff]  ;;  %v2152_v42 = vld [vmem:[%s2942_s20 + $0x130] sm:$0xff]  ;;  %2072 = sbr.rel (!%p2069_p12) target bundleno = 1020 (0x3fc), region = 146 }
 0x40f   : >> { %2149 = vst [vmem:[%s2938_s12 + $0x120] sm:$0xff] %v2148_v40  ;;  %2151 = vst [vmem:[%s2938_s12 + $0x128] sm:$0xff] %v2150_v41  ;;  %v2154_v43 = vld [vmem:[%s2942_s20 + $0x138] sm:$0xff]  ;;  %v2156_v44 = vld [vmem:[%s2942_s20 + $0x140] sm:$0xff] }
 0x410   : >> { %2153 = vst [vmem:[%s2938_s12 + $0x130] sm:$0xff] %v2152_v42  ;;  %v2158_v45 = vld [vmem:[%s2942_s20 + $0x148] sm:$0xff]  ;;  %2155 = vst [vmem:[%s2938_s12 + $0x138] sm:$0xff] %v2154_v43  ;;  %v2160_v46 = vld [vmem:[%s2942_s20 + $0x150] sm:$0xff] }
 0x411   : >> { %2157 = vst [vmem:[%s2938_s12 + $0x140] sm:$0xff] %v2156_v44  ;;  %2159 = vst [vmem:[%s2938_s12 + $0x148] sm:$0xff] %v2158_v45  ;;  %v2162_v47 = vld [vmem:[%s2942_s20 + $0x158] sm:$0xff]  ;;  %v2164_v48 = vld [vmem:[%s2942_s20 + $0x160] sm:$0xff] }
 0x412   : >> { %2161 = vst [vmem:[%s2938_s12 + $0x150] sm:$0xff] %v2160_v46  ;;  %2163 = vst [vmem:[%s2938_s12 + $0x158] sm:$0xff] %v2162_v47  ;;  %v2166_v49 = vld [vmem:[%s2942_s20 + $0x168] sm:$0xff]  ;;  %v2168_v50 = vld [vmem:[%s2942_s20 + $0x170] sm:$0xff] }
 0x413   : >> { %2165 = vst [vmem:[%s2938_s12 + $0x160] sm:$0xff] %v2164_v48  ;;  %v2170_v51 = vld [vmem:[%s2942_s20 + $0x178] sm:$0xff]  ;;  %2167 = vst [vmem:[%s2938_s12 + $0x168] sm:$0xff] %v2166_v49  ;;  %s3725_s20 = smov %s3628_s26 }
 0x414   : >> { %2169 = vst [vmem:[%s2938_s12 + $0x170] sm:$0xff] %v2168_v50  ;;  %2171 = vst [vmem:[%s2938_s12 + $0x178] sm:$0xff] %v2170_v51  ;;  %s3724_s12 = smov %s3631_s27 }
 0x415 PF: > { %2878 = sdivrem.u32 %s3731_s30, 48 }
 0x416   : > { %s2370_s28 = smul.u32 384, %s3555_s17 }
 0x418   : > { %s2183_s29 = scalar_lea.vmem %s3398_s11, %s2370_s28 [#allocation2]   ;;  %s2185_s14 = scalar_lea.vmem %s3549_s19, %s2370_s28  }
 0x41e   : > { %s2879_s15 = spop.drf %2878 }
 0x41f   : > { %p2372_p13 = scmp.le.s32.totalorder %s2879_s15, 0 }
 0x420   : > { %s2952_s18 = smov (!%p2372_p13), %s2185_s14   ;;  %s2956_s21 = smov (!%p2372_p13), %s2183_s29  }
 0x421   : > { %2276 = sbr.rel (%p2372_p13) target bundleno = 1074 (0x432), region = 151  ;;  %s2960_s25 = smov (!%p2372_p13), 0  }
 0x422   : > { %s2964_s26 = smov (!%p2372_p13), 0  }
 0x428 LB: >> { %v2195_v52 = vld [vmem:[%s2958_s21] sm:$0xff]  ;;  %s2197_s12 = sadd.s32 1, %s2962_s25  ;;  %s2189_s26 = sadd.s32 1, %s2966_s26   ;;  %s2966_s26 = sphi %s2964_s26, %s2189_s26   ;;  %s2962_s25 = sphi %s2960_s25, %s2961_s25   ;;  %s2958_s21 = sphi %s2956_s21, %s2202_s21   ;;  %s2954_s18 = sphi %s2952_s18, %s2203_s18  }
 0x429   : >> { %2196 = vst [vmem:[%s2954_s18] sm:$0xff] %v2195_v52  ;;  %p2198_p0 = scmp.ge.s32.totalorder %s2197_s12, %s2879_s15  ;;  %p2188_p1 = scmp.ge.s32.totalorder %s2189_s26, %s2879_s15 }
 0x42b   : >> { %s3735_s12 = smov (%p2198_p0, %s2197_s12), 0  ;;  %2191 = sbr.rel (!%p2188_p1) target bundleno = 1064 (0x428), region = 157 }
 0x42c   : >> { %s2373_s11 = sshll.u32 %s3735_s12, 3  ;;  %s2961_s25 = smov %s3735_s12  }
 0x42d   : >> { %s2202_s21 = scalar_lea.vmem %s2183_s29, %s2373_s11 [#allocation2]   ;;  %s2203_s18 = scalar_lea.vmem %s2185_s14, %s2373_s11  }
 0x432 PF: > { %p16_p2 = scmp.ge.s32.totalorder %s3033_s13, 4   ;;  %s3727_s30 = smov %s2930_s10 }
 0x433   : > { %s3728_s10 = smov %s3041_s16  ;;  %s3729_s11 = smov %s3033_s13 }
 0x434   :  { %18 = sbr.rel (!%p16_p2) target bundleno = 2 (0x2), region = 168 }

</bundles_post_ra>
